<compile_context>
chip_gen: v7x
topology: tpu7x:2x2x1
jax: 0.10.0
libtpu: 0.0.40
codegen_flags: <defaults>
</compile_context>

<pallas_src>
import functools
import numpy as np
import jax
import jax.numpy as jnp
from jax import lax
from jax.experimental import pallas as pl
from jax.experimental.pallas import tpu as pltpu

NUM_CLASSES = 2          # cfg.MODEL.NUM_CLASSES (background + text)
BOXES_PER_LOC = 4        # anchors per feature-map location (all heads)

_VMEM_LIMIT = 40 * 1024 * 1024   # fits every layer at this resolution on all gens
                                 # TODO(synk): re-budget for production input sizes on v7x (64 MiB VMEM)


def _round_up(x, m):
    return (x + m - 1) // m * m


# ----------------------------------------------------------------------------
# Generic fused Conv2d kernel (whole-map block, flattened M, bf16 MXU, f32 acc)
# ----------------------------------------------------------------------------

def _conv_kernel(x_ref, w_ref, b_ref, o_ref, *, kh, kw, wp, activation):
    """One (Cout-tile, batch) step of a stride-1 conv over the whole map.

    x_ref : (1, Mp, Cin)  bf16 -- padded input map with rows flattened
            (row stride == wp, a multiple of 8, + KW-1 zero tail rows).
    w_ref : (KH, KW, Cin, tn) bf16 -- resident across the batch sweep.
    b_ref : (1, tn) f32
    o_ref : (1, Mo, tn) with Mo = Ho*wp ("wide" rows); the wrapper drops the
            (wp - Wo) garbage columns of each output row.
    """
    mo, tn = o_ref.shape[1], o_ref.shape[2]
    acc = jnp.zeros((mo, tn), jnp.float32)
    for ky in range(kh):
        for kx in range(kw):
            off = ky * wp + kx                     # static, contiguous M-slice
            acc = acc + jnp.dot(x_ref[0, off:off + mo, :], w_ref[ky, kx],
                                preferred_element_type=jnp.float32)
    y = acc + b_ref[...]
    if activation == "relu":
        y = jnp.maximum(y, 0.0)
    elif activation == "sigmoid":
        y = jax.nn.sigmoid(y)
    o_ref[0] = y.astype(o_ref.dtype)


def _pad_flatten(x_bf16, padding, kw, wp_pad, hp):
    """Zero-pad (border + width alignment + KW-1 tail rows) and flatten rows."""
    B, H, W, C = x_bf16.shape
    extra_w = wp_pad - (W + 2 * padding)
    xb = jnp.pad(x_bf16, ((0, 0), (padding, padding),
                          (padding, padding + extra_w), (0, 0)))
    xf = xb.reshape(B, hp * wp_pad, C)
    if kw > 1:
        xf = jnp.pad(xf, ((0, 0), (0, 8), (0, 0)))   # tail rows read by the last taps
    return xf


def conv2d(x, w, b, stride=1, padding=0, activation="none",
           out_dtype=jnp.bfloat16):
    """x:(B,H,W,Cin) NHWC, w:(KH,KW,Cin,Cout), b:(Cout,) f32."""
    B, H, W, Cin = x.shape
    KH, KW, _, Cout = w.shape
    Hp, Wp = H + 2 * padding, W + 2 * padding
    Ho, Wo = Hp - KH + 1, Wp - KW + 1              # stride-1 output size
    Wp_pad = _round_up(Wp, 8)                      # aligned row stride (sublane)
    Mo = Ho * Wp_pad

    # bf16 cast happens BEFORE the pad so no f32 padded copy ever hits HBM.
    xf = _pad_flatten(x.astype(jnp.bfloat16), padding, KW, Wp_pad, Hp)
    Mp = xf.shape[1]

    # Lane-dense Cout: pad small heads (40, 64, ...) up to 128 and slice back.
    Cout_p = _round_up(Cout, 128)
    if Cout_p != Cout:
        w = jnp.pad(w, ((0, 0), (0, 0), (0, 0), (0, Cout_p - Cout)))
        b = jnp.pad(b, (0, Cout_p - Cout))
    tn = 256 if Cout_p % 256 == 0 else 128
    nt = Cout_p // tn
    wb = w.astype(jnp.bfloat16)
    bb = b.reshape(1, Cout_p).astype(jnp.float32)

    out = pl.pallas_call(
        functools.partial(_conv_kernel, kh=KH, kw=KW, wp=Wp_pad,
                          activation=activation),
        out_shape=jax.ShapeDtypeStruct((B, Mo, Cout_p), out_dtype),
        grid_spec=pltpu.PrefetchScalarGridSpec(
            num_scalar_prefetch=0,
            # Cout tile outer-most: the weight tile is DMA'd once per tile and
            # stays resident while the batch axis streams past it.
            grid=(nt, B),
            in_specs=[
                pl.BlockSpec((1, Mp, Cin), lambda n, bi: (bi, 0, 0)),
                pl.BlockSpec((KH, KW, Cin, tn), lambda n, bi: (0, 0, 0, n)),
                pl.BlockSpec((1, tn), lambda n, bi: (0, n)),
            ],
            out_specs=pl.BlockSpec((1, Mo, tn), lambda n, bi: (bi, 0, n)),
        ),
        compiler_params=pltpu.CompilerParams(
            dimension_semantics=("parallel", "parallel"),
            vmem_limit_bytes=_VMEM_LIMIT),
    )(xf, wb, bb)

    out = out.reshape(B, Ho, Wp_pad, Cout_p)[:, :, :Wo, :Cout]
    if stride != 1:
        # TODO(synk): fold stride into the kernel (stride-aware output map);
        # only the two tiny stride-2 extras layers hit this path.
        out = out[:, ::stride, ::stride, :]
    return out


# ----------------------------------------------------------------------------
# Fused score head: conv2(3x3) + folded BN2 + ReLU + conv3(1x1, 64->1) + sigmoid
# ----------------------------------------------------------------------------

def _score_kernel(x_ref, w2_ref, b2_ref, w3_ref, b3_ref, o_ref, *, kh, kw, wp):
    mo = o_ref.shape[1]
    cmid = w2_ref.shape[3]
    acc = jnp.zeros((mo, cmid), jnp.float32)
    for ky in range(kh):
        for kx in range(kw):
            off = ky * wp + kx
            acc = acc + jnp.dot(x_ref[0, off:off + mo, :], w2_ref[ky, kx],
                                preferred_element_type=jnp.float32)
    y = jnp.maximum(acc + b2_ref[...], 0.0)        # BN folded into w2/b2
    # conv3 (64->1) as VPU multiply + lane reduce instead of an N=1 MXU matmul.
    s = jnp.sum(y * w3_ref[...], axis=-1, keepdims=True) + b3_ref[...]
    o_ref[0] = jax.nn.sigmoid(s)


def score_head(x, w2, b2, w3, b3):
    """x:(B,H,W,Cin); returns the (B,H,W) sigmoid score map."""
    B, H, W, Cin = x.shape
    KH, KW, _, Cmid = w2.shape
    padding = 1
    Hp, Wp = H + 2 * padding, W + 2 * padding
    Ho, Wo = H, W
    Wp_pad = _round_up(Wp, 8)
    Mo = Ho * Wp_pad
    xf = _pad_flatten(x.astype(jnp.bfloat16), padding, KW, Wp_pad, Hp)
    Mp = xf.shape[1]

    out = pl.pallas_call(
        functools.partial(_score_kernel, kh=KH, kw=KW, wp=Wp_pad),
        out_shape=jax.ShapeDtypeStruct((B, Mo, 1), jnp.float32),
        grid_spec=pltpu.PrefetchScalarGridSpec(
            num_scalar_prefetch=0,
            grid=(B,),
            in_specs=[
                pl.BlockSpec((1, Mp, Cin), lambda bi: (bi, 0, 0)),
                pl.BlockSpec((KH, KW, Cin, Cmid), lambda bi: (0, 0, 0, 0)),
                pl.BlockSpec((1, Cmid), lambda bi: (0, 0)),
                pl.BlockSpec((1, Cmid), lambda bi: (0, 0)),
                pl.BlockSpec((1, 1), lambda bi: (0, 0)),
            ],
            out_specs=pl.BlockSpec((1, Mo, 1), lambda bi: (bi, 0, 0)),
        ),
        compiler_params=pltpu.CompilerParams(
            dimension_semantics=("parallel",),
            vmem_limit_bytes=_VMEM_LIMIT),
    )(xf,
      w2.astype(jnp.bfloat16),
      b2.reshape(1, Cmid).astype(jnp.float32),
      w3.reshape(1, Cmid).astype(jnp.float32),
      b3.reshape(1, 1).astype(jnp.float32))

    return out.reshape(B, Ho, Wp_pad)[:, :, :Wo]


# ----------------------------------------------------------------------------
# L2Norm kernel
# ----------------------------------------------------------------------------

def _l2norm_kernel(x_ref, w_ref, o_ref):
    x = x_ref[...].astype(jnp.float32)
    ssq = jnp.sum(x * x, axis=-1, keepdims=True)
    # NOTE: reference divides by (norm + eps); rsqrt(ssq + eps) keeps the
    # divide on the EUP and only differs for ~zero vectors.
    inv = lax.rsqrt(ssq + 1e-12)
    o_ref[...] = (x * inv * w_ref[...]).astype(o_ref.dtype)


def l2norm(x, weight):
    """Channel-wise L2 normalization * learnable scale (L2Norm(512, scale=20))."""
    B, H, W, C = x.shape
    M = B * H * W
    tm = min(512, _round_up(M, 8))
    Mp = _round_up(M, tm)
    xm = x.reshape(M, C)
    if Mp != M:
        xm = jnp.pad(xm, ((0, Mp - M), (0, 0)))
    out = pl.pallas_call(
        _l2norm_kernel,
        out_shape=jax.ShapeDtypeStruct((Mp, C), x.dtype),
        grid_spec=pltpu.PrefetchScalarGridSpec(
            num_scalar_prefetch=0,
            grid=(Mp // tm,),
            in_specs=[pl.BlockSpec((tm, C), lambda i: (i, 0)),
                      pl.BlockSpec((1, C), lambda i: (0, 0))],
            out_specs=pl.BlockSpec((tm, C), lambda i: (i, 0)),
        ),
        compiler_params=pltpu.CompilerParams(dimension_semantics=("parallel",)),
    )(xm, weight.reshape(1, C).astype(jnp.float32))
    if Mp != M:
        out = out[:M]
    return out.reshape(B, H, W, C)


# ----------------------------------------------------------------------------
# Glue: maxpool, bilinear upsample (static stencil, no gathers), BN folding
# ----------------------------------------------------------------------------

def maxpool2d(x, k, s):
    B, H, W, C = x.shape
    if k == s and H % k == 0 and W % k == 0:
        return x.reshape(B, H // k, k, W // k, k, C).max(axis=(2, 4))
    return lax.reduce_window(x, jnp.array(-jnp.inf, x.dtype), lax.max,
                             (1, k, k, 1), (1, s, s, 1), "VALID")


def upsample_bilinear_2x(x):
    """nn.Upsample(scale_factor=2, mode='bilinear', align_corners=False)."""
    def up_axis(v, axis):
        n = v.shape[axis]
        lo = jnp.concatenate([lax.slice_in_dim(v, 0, 1, axis=axis),
                              lax.slice_in_dim(v, 0, n - 1, axis=axis)], axis=axis)
        hi = jnp.concatenate([lax.slice_in_dim(v, 1, n, axis=axis),
                              lax.slice_in_dim(v, n - 1, n, axis=axis)], axis=axis)
        even = 0.75 * v + 0.25 * lo
        odd = 0.75 * v + 0.25 * hi
        st = jnp.stack([even, odd], axis=axis + 1)
        new_shape = list(v.shape)
        new_shape[axis] = 2 * n
        return st.reshape(new_shape)

    x = up_axis(x, 1)   # H
    x = up_axis(x, 2)   # W
    return x


def fold_bn(w, b, gamma, beta, eps=1e-5):
    """Fold eval-mode BatchNorm into the preceding conv.

    TODO(synk): assumes freshly-initialized running stats (mean=0, var=1) as
    produced by nn.BatchNorm2d(); trained running stats would need plumbing.
    """
    s = gamma / jnp.sqrt(1.0 + eps)
    return w * s, b * s + beta


# ----------------------------------------------------------------------------
# Model definition (synthetic VGG / extras / headers, per SSD.__init__ shapes)
# ----------------------------------------------------------------------------

VGG_CFG = [
    ("conv", 3, 3, 64, 1, 1), ("relu",), ("conv", 3, 64, 64, 1, 1), ("relu",), ("pool", 2, 2),
    ("conv", 3, 64, 128, 1, 1), ("relu",), ("conv", 3, 128, 128, 1, 1), ("relu",), ("pool", 2, 2),
    ("conv", 3, 128, 256, 1, 1), ("relu",), ("conv", 3, 256, 256, 1, 1), ("relu",),
    ("conv", 3, 256, 256, 1, 1), ("relu",), ("pool", 2, 2),
    ("conv", 3, 256, 512, 1, 1), ("relu",), ("conv", 3, 512, 512, 1, 1), ("relu",),
    ("conv", 3, 512, 512, 1, 1), ("relu",),            # index 22
    ("pool", 2, 2),                                    # 23
    ("conv", 3, 512, 1024, 1, 1), ("relu",),           # 24, 25
    ("conv", 1, 1024, 1024, 1, 0), ("relu",),          # 26, 27
]
DOWNSAMPLE_IDX = (15, 22, 27)   # 256ch, 512ch, 1024ch taps

EXTRAS_CFG = [
    (1, 1024, 256, 1, 0), (3, 256, 512, 2, 1),
    (1, 512, 128, 1, 0), (3, 128, 256, 2, 1),
    (1, 256, 128, 1, 0), (3, 128, 256, 1, 1),
    (1, 256, 128, 1, 0), (3, 128, 256, 1, 1),
]
SOURCE_CHANNELS = [512, 1024, 512, 256, 256, 256]


class _KeyGen:
    def __init__(self, key):
        self.key = key

    def __call__(self):
        self.key, sub = jax.random.split(self.key)
        return sub


def init_params(key):
    kg = _KeyGen(key)

    def conv(k, cin, cout):
        fan_in = cin * k * k
        bound = float(np.sqrt(6.0 / fan_in))     # kaiming_uniform_ default
        w = jax.random.uniform(kg(), (k, k, cin, cout), jnp.float32, -bound, bound)
        return (w, jnp.zeros((cout,), jnp.float32))

    def bn(c):
        gamma = 1.0 + 0.02 * jax.random.normal(kg(), (c,), jnp.float32)
        return (gamma, jnp.zeros((c,), jnp.float32))

    params = {}
    params["vgg"] = [conv(ly[1], ly[2], ly[3]) for ly in VGG_CFG if ly[0] == "conv"]
    params["l2norm"] = jnp.full((512,), 20.0, jnp.float32)
    params["extras"] = [conv(k, cin, cout) for (k, cin, cout, _, _) in EXTRAS_CFG]
    params["reg"] = [conv(3, c, BOXES_PER_LOC * 8) for c in SOURCE_CHANNELS]
    params["cls"] = [conv(3, c, BOXES_PER_LOC * NUM_CLASSES) for c in SOURCE_CHANNELS]
    params["unpool1_conv2d"] = conv(1, 1024, 512)
    params["unpool2_conv2d"] = conv(1, 512, 256)
    params["conv1"] = conv(1, 512, 512)
    params["bn1"] = bn(512)
    params["conv2"] = conv(3, 256, 64)
    params["bn2"] = bn(64)
    params["conv3"] = conv(1, 64, 1)
    return params


def ssd_forward(params, x):
    """Eval-mode SSD forward. x: (B, H, W, 3) NHWC float32."""
    B = x.shape[0]
    dfm = {}
    conv_i = 0
    i = 0
    while i < len(VGG_CFG):
        ly = VGG_CFG[i]
        if ly[0] == "conv":
            _, k, cin, cout, stride, pad = ly
            w, b = params["vgg"][conv_i]
            conv_i += 1
            fuse = (i + 1 < len(VGG_CFG)) and VGG_CFG[i + 1][0] == "relu"
            x = conv2d(x, w, b, stride=stride, padding=pad,
                       activation="relu" if fuse else "none")
            if fuse:
                i += 1
        elif ly[0] == "relu":
            x = jnp.maximum(x, 0.0)
        else:
            x = maxpool2d(x, ly[1], ly[2])
        if i in DOWNSAMPLE_IDX:
            dfm[i] = x
        i += 1

    sources = [l2norm(dfm[22], params["l2norm"]), x]

    # FCN / score-map branch
    h = dfm[27]
    g = upsample_bilinear_2x(h)
    w, b = params["unpool1_conv2d"]
    g = conv2d(g, w, b)                                 # 1x1 1024->512
    g = g + dfm[22]
    w1, b1 = fold_bn(*params["conv1"], *params["bn1"])
    c = conv2d(g, w1, b1, activation="relu")            # 1x1 512->512 (+BN+ReLU)
    g = upsample_bilinear_2x(c)
    w, b = params["unpool2_conv2d"]
    g = conv2d(g, w, b)                                 # 1x1 512->256
    g = g + dfm[15]
    w2, b2 = fold_bn(*params["conv2"], *params["bn2"])
    w3, b3 = params["conv3"]
    f_score = score_head(g, w2, b2, w3, b3)             # fused conv2+bn2+relu+conv3+sigmoid

    # Extras (single loop; dead duplicate removed per review)
    for k_idx, ((kk, cin, cout, stride, pad), (w, b)) in enumerate(
            zip(EXTRAS_CFG, params["extras"])):
        x = conv2d(x, w, b, stride=stride, padding=pad, activation="relu")
        if k_idx % 2 == 1:
            sources.append(x)

    # Heads: reg (32ch) + cls (8ch) fused into one conv per source; conv2d
    # lane-pads 40 -> 128 channels internally and slices back here.
    confidences, locations = [], []
    nloc = BOXES_PER_LOC * 8
    for src, (wr, br), (wc, bc) in zip(sources, params["reg"], params["cls"]):
        wh = jnp.concatenate([wr, wc], axis=-1)
        bh = jnp.concatenate([br, bc], axis=0)
        y = conv2d(src, wh, bh, padding=1, out_dtype=jnp.float32)
        locations.append(y[..., :nloc].reshape(B, -1))
        confidences.append(y[..., nloc:].reshape(B, -1))
    confidences = jnp.concatenate(confidences, axis=1).reshape(B, -1, NUM_CLASSES)
    locations = jnp.concatenate(locations, axis=1).reshape(B, -1, 8)

    # (B, 96, 2) softmax: left to XLA per review (a Pallas kernel here is pure
    # launch overhead with lane width 2).
    confidences = jax.nn.softmax(confidences, axis=2)
    # TODO(synk): PriorBox + box_utils.convert_locations_to_boxes (quad decode)
    # and MultiBoxLoss are external modules not provided; returning raw locations.
    return confidences, locations, f_score


if __name__ == "__main__":
    # --- conv kernel self-check against the XLA reference conv -------------
    xt = jax.random.normal(jax.random.PRNGKey(1), (2, 9, 11, 16), jnp.float32)
    wt = jax.random.normal(jax.random.PRNGKey(2), (3, 3, 16, 24), jnp.float32) * 0.1
    bt = jax.random.normal(jax.random.PRNGKey(3), (24,), jnp.float32) * 0.1
    got = conv2d(xt, wt, bt, padding=1, activation="relu", out_dtype=jnp.float32)
    ref = jax.nn.relu(lax.conv_general_dilated(
        xt, wt, (1, 1), [(1, 1), (1, 1)],
        dimension_numbers=("NHWC", "HWIO", "NHWC")) + bt)
    max_err = float(jnp.max(jnp.abs(got - ref)))
    assert max_err < 0.25, f"conv2d mismatch vs XLA reference: {max_err}"

    # --- full model ---------------------------------------------------------
    key = jax.random.PRNGKey(0)
    pkey, xkey = jax.random.split(key)
    params = init_params(pkey)
    x = jax.random.normal(xkey, (2, 32, 32, 3), jnp.float32)  # NHWC (torch: (2,3,32,32))

    fwd = jax.jit(ssd_forward)
    conf, loc, score = fwd(params, x)
    jax.block_until_ready((conf, loc, score))

    assert conf.shape == (2, 96, NUM_CLASSES), conf.shape
    assert loc.shape == (2, 96, 8), loc.shape
    assert score.shape == (2, 8, 8), score.shape
    assert bool(jnp.all(jnp.isfinite(conf))) and bool(jnp.all(jnp.isfinite(score)))
    assert bool(jnp.all(jnp.isfinite(loc)))
    print("KERNEL_OK")
</pallas_src>

<mosaic_0001>
module attributes {stable_mosaic.version = 11 : i64} {
  func.func @_conv_kernel(%arg0: i32, %arg1: i32, %arg2: memref<1x184x16xbf16, #tpu.memory_space<vmem>>, %arg3: memref<3x3x16x128xbf16, #tpu.memory_space<vmem>>, %arg4: memref<1x128xf32, #tpu.memory_space<vmem>>, %arg5: memref<1x144x128xf32, #tpu.memory_space<vmem>>) attributes {dimension_semantics = [#tpu.dimension_semantics<parallel>, #tpu.dimension_semantics<parallel>], iteration_bounds = array<i64: 1, 2>, scalar_prefetch = 0 : i64, scratch_operands = 0 : i64, tpu.core_type = #tpu.core_type<tc>, window_params = [{transform_indices = @transform_0, window_bounds = array<i64: 1, 184, 16>}, {transform_indices = @transform_1, window_bounds = array<i64: 3, 3, 16, 128>}, {transform_indices = @transform_2, window_bounds = array<i64: 1, 128>}, {transform_indices = @transform_3, window_bounds = array<i64: 1, 144, 128>}]} {
    %cst = arith.constant 0.000000e+00 : f32
    %0 = vector.broadcast %cst : f32 to vector<144x128xf32>
    %c0 = arith.constant 0 : index
    %c0_0 = arith.constant 0 : index
    %c0_1 = arith.constant 0 : index
    %1 = vector.load %arg2[%c0, %c0_0, %c0_1] : memref<1x184x16xbf16, #tpu.memory_space<vmem>>, vector<1x144x16xbf16>
    %2 = vector.shape_cast %1 : vector<1x144x16xbf16> to vector<144x16xbf16>
    %c0_2 = arith.constant 0 : index
    %c0_3 = arith.constant 0 : index
    %c0_4 = arith.constant 0 : index
    %c0_5 = arith.constant 0 : index
    %3 = vector.load %arg3[%c0_2, %c0_3, %c0_4, %c0_5] : memref<3x3x16x128xbf16, #tpu.memory_space<vmem>>, vector<1x1x16x128xbf16>
    %4 = vector.shape_cast %3 : vector<1x1x16x128xbf16> to vector<16x128xbf16>
    %cst_6 = arith.constant dense<0.000000e+00> : vector<144x128xf32>
    %5 = tpu.matmul %2, %4, %cst_6 {dimension_numbers = #tpu.dot_dimension_numbers<[1], [0], [0], [1], [0, 0, 1, 1], [], []>} : vector<144x16xbf16>, vector<16x128xbf16>, vector<144x128xf32> -> vector<144x128xf32>
    %6 = arith.addf %0, %5 : vector<144x128xf32>
    %c0_7 = arith.constant 0 : index
    %c1 = arith.constant 1 : index
    %c0_8 = arith.constant 0 : index
    %7 = vector.load %arg2[%c0_7, %c1, %c0_8] : memref<1x184x16xbf16, #tpu.memory_space<vmem>>, vector<1x144x16xbf16>
    %8 = vector.shape_cast %7 : vector<1x144x16xbf16> to vector<144x16xbf16>
    %c0_9 = arith.constant 0 : index
    %c1_10 = arith.constant 1 : index
    %c0_11 = arith.constant 0 : index
    %c0_12 = arith.constant 0 : index
    %9 = vector.load %arg3[%c0_9, %c1_10, %c0_11, %c0_12] : memref<3x3x16x128xbf16, #tpu.memory_space<vmem>>, vector<1x1x16x128xbf16>
    %10 = vector.shape_cast %9 : vector<1x1x16x128xbf16> to vector<16x128xbf16>
    %cst_13 = arith.constant dense<0.000000e+00> : vector<144x128xf32>
    %11 = tpu.matmul %8, %10, %cst_13 {dimension_numbers = #tpu.dot_dimension_numbers<[1], [0], [0], [1], [0, 0, 1, 1], [], []>} : vector<144x16xbf16>, vector<16x128xbf16>, vector<144x128xf32> -> vector<144x128xf32>
    %12 = arith.addf %6, %11 : vector<144x128xf32>
    %c0_14 = arith.constant 0 : index
    %c2 = arith.constant 2 : index
    %c0_15 = arith.constant 0 : index
    %13 = vector.load %arg2[%c0_14, %c2, %c0_15] : memref<1x184x16xbf16, #tpu.memory_space<vmem>>, vector<1x144x16xbf16>
    %14 = vector.shape_cast %13 : vector<1x144x16xbf16> to vector<144x16xbf16>
    %c0_16 = arith.constant 0 : index
    %c2_17 = arith.constant 2 : index
    %c0_18 = arith.constant 0 : index
    %c0_19 = arith.constant 0 : index
    %15 = vector.load %arg3[%c0_16, %c2_17, %c0_18, %c0_19] : memref<3x3x16x128xbf16, #tpu.memory_space<vmem>>, vector<1x1x16x128xbf16>
    %16 = vector.shape_cast %15 : vector<1x1x16x128xbf16> to vector<16x128xbf16>
    %cst_20 = arith.constant dense<0.000000e+00> : vector<144x128xf32>
    %17 = tpu.matmul %14, %16, %cst_20 {dimension_numbers = #tpu.dot_dimension_numbers<[1], [0], [0], [1], [0, 0, 1, 1], [], []>} : vector<144x16xbf16>, vector<16x128xbf16>, vector<144x128xf32> -> vector<144x128xf32>
    %18 = arith.addf %12, %17 : vector<144x128xf32>
    %c0_21 = arith.constant 0 : index
    %c16 = arith.constant 16 : index
    %c0_22 = arith.constant 0 : index
    %19 = vector.load %arg2[%c0_21, %c16, %c0_22] : memref<1x184x16xbf16, #tpu.memory_space<vmem>>, vector<1x144x16xbf16>
    %20 = vector.shape_cast %19 : vector<1x144x16xbf16> to vector<144x16xbf16>
    %c1_23 = arith.constant 1 : index
    %c0_24 = arith.constant 0 : index
    %c0_25 = arith.constant 0 : index
    %c0_26 = arith.constant 0 : index
    %21 = vector.load %arg3[%c1_23, %c0_24, %c0_25, %c0_26] : memref<3x3x16x128xbf16, #tpu.memory_space<vmem>>, vector<1x1x16x128xbf16>
    %22 = vector.shape_cast %21 : vector<1x1x16x128xbf16> to vector<16x128xbf16>
    %cst_27 = arith.constant dense<0.000000e+00> : vector<144x128xf32>
    %23 = tpu.matmul %20, %22, %cst_27 {dimension_numbers = #tpu.dot_dimension_numbers<[1], [0], [0], [1], [0, 0, 1, 1], [], []>} : vector<144x16xbf16>, vector<16x128xbf16>, vector<144x128xf32> -> vector<144x128xf32>
    %24 = arith.addf %18, %23 : vector<144x128xf32>
    %c0_28 = arith.constant 0 : index
    %c17 = arith.constant 17 : index
    %c0_29 = arith.constant 0 : index
    %25 = vector.load %arg2[%c0_28, %c17, %c0_29] : memref<1x184x16xbf16, #tpu.memory_space<vmem>>, vector<1x144x16xbf16>
    %26 = vector.shape_cast %25 : vector<1x144x16xbf16> to vector<144x16xbf16>
    %c1_30 = arith.constant 1 : index
    %c1_31 = arith.constant 1 : index
    %c0_32 = arith.constant 0 : index
    %c0_33 = arith.constant 0 : index
    %27 = vector.load %arg3[%c1_30, %c1_31, %c0_32, %c0_33] : memref<3x3x16x128xbf16, #tpu.memory_space<vmem>>, vector<1x1x16x128xbf16>
    %28 = vector.shape_cast %27 : vector<1x1x16x128xbf16> to vector<16x128xbf16>
    %cst_34 = arith.constant dense<0.000000e+00> : vector<144x128xf32>
    %29 = tpu.matmul %26, %28, %cst_34 {dimension_numbers = #tpu.dot_dimension_numbers<[1], [0], [0], [1], [0, 0, 1, 1], [], []>} : vector<144x16xbf16>, vector<16x128xbf16>, vector<144x128xf32> -> vector<144x128xf32>
    %30 = arith.addf %24, %29 : vector<144x128xf32>
    %c0_35 = arith.constant 0 : index
    %c18 = arith.constant 18 : index
    %c0_36 = arith.constant 0 : index
    %31 = vector.load %arg2[%c0_35, %c18, %c0_36] : memref<1x184x16xbf16, #tpu.memory_space<vmem>>, vector<1x144x16xbf16>
    %32 = vector.shape_cast %31 : vector<1x144x16xbf16> to vector<144x16xbf16>
    %c1_37 = arith.constant 1 : index
    %c2_38 = arith.constant 2 : index
    %c0_39 = arith.constant 0 : index
    %c0_40 = arith.constant 0 : index
    %33 = vector.load %arg3[%c1_37, %c2_38, %c0_39, %c0_40] : memref<3x3x16x128xbf16, #tpu.memory_space<vmem>>, vector<1x1x16x128xbf16>
    %34 = vector.shape_cast %33 : vector<1x1x16x128xbf16> to vector<16x128xbf16>
    %cst_41 = arith.constant dense<0.000000e+00> : vector<144x128xf32>
    %35 = tpu.matmul %32, %34, %cst_41 {dimension_numbers = #tpu.dot_dimension_numbers<[1], [0], [0], [1], [0, 0, 1, 1], [], []>} : vector<144x16xbf16>, vector<16x128xbf16>, vector<144x128xf32> -> vector<144x128xf32>
    %36 = arith.addf %30, %35 : vector<144x128xf32>
    %c0_42 = arith.constant 0 : index
    %c32 = arith.constant 32 : index
    %c0_43 = arith.constant 0 : index
    %37 = vector.load %arg2[%c0_42, %c32, %c0_43] : memref<1x184x16xbf16, #tpu.memory_space<vmem>>, vector<1x144x16xbf16>
    %38 = vector.shape_cast %37 : vector<1x144x16xbf16> to vector<144x16xbf16>
    %c2_44 = arith.constant 2 : index
    %c0_45 = arith.constant 0 : index
    %c0_46 = arith.constant 0 : index
    %c0_47 = arith.constant 0 : index
    %39 = vector.load %arg3[%c2_44, %c0_45, %c0_46, %c0_47] : memref<3x3x16x128xbf16, #tpu.memory_space<vmem>>, vector<1x1x16x128xbf16>
    %40 = vector.shape_cast %39 : vector<1x1x16x128xbf16> to vector<16x128xbf16>
    %cst_48 = arith.constant dense<0.000000e+00> : vector<144x128xf32>
    %41 = tpu.matmul %38, %40, %cst_48 {dimension_numbers = #tpu.dot_dimension_numbers<[1], [0], [0], [1], [0, 0, 1, 1], [], []>} : vector<144x16xbf16>, vector<16x128xbf16>, vector<144x128xf32> -> vector<144x128xf32>
    %42 = arith.addf %36, %41 : vector<144x128xf32>
    %c0_49 = arith.constant 0 : index
    %c33 = arith.constant 33 : index
    %c0_50 = arith.constant 0 : index
    %43 = vector.load %arg2[%c0_49, %c33, %c0_50] : memref<1x184x16xbf16, #tpu.memory_space<vmem>>, vector<1x144x16xbf16>
    %44 = vector.shape_cast %43 : vector<1x144x16xbf16> to vector<144x16xbf16>
    %c2_51 = arith.constant 2 : index
    %c1_52 = arith.constant 1 : index
    %c0_53 = arith.constant 0 : index
    %c0_54 = arith.constant 0 : index
    %45 = vector.load %arg3[%c2_51, %c1_52, %c0_53, %c0_54] : memref<3x3x16x128xbf16, #tpu.memory_space<vmem>>, vector<1x1x16x128xbf16>
    %46 = vector.shape_cast %45 : vector<1x1x16x128xbf16> to vector<16x128xbf16>
    %cst_55 = arith.constant dense<0.000000e+00> : vector<144x128xf32>
    %47 = tpu.matmul %44, %46, %cst_55 {dimension_numbers = #tpu.dot_dimension_numbers<[1], [0], [0], [1], [0, 0, 1, 1], [], []>} : vector<144x16xbf16>, vector<16x128xbf16>, vector<144x128xf32> -> vector<144x128xf32>
    %48 = arith.addf %42, %47 : vector<144x128xf32>
    %c0_56 = arith.constant 0 : index
    %c34 = arith.constant 34 : index
    %c0_57 = arith.constant 0 : index
    %49 = vector.load %arg2[%c0_56, %c34, %c0_57] : memref<1x184x16xbf16, #tpu.memory_space<vmem>>, vector<1x144x16xbf16>
    %50 = vector.shape_cast %49 : vector<1x144x16xbf16> to vector<144x16xbf16>
    %c2_58 = arith.constant 2 : index
    %c2_59 = arith.constant 2 : index
    %c0_60 = arith.constant 0 : index
    %c0_61 = arith.constant 0 : index
    %51 = vector.load %arg3[%c2_58, %c2_59, %c0_60, %c0_61] : memref<3x3x16x128xbf16, #tpu.memory_space<vmem>>, vector<1x1x16x128xbf16>
    %52 = vector.shape_cast %51 : vector<1x1x16x128xbf16> to vector<16x128xbf16>
    %cst_62 = arith.constant dense<0.000000e+00> : vector<144x128xf32>
    %53 = tpu.matmul %50, %52, %cst_62 {dimension_numbers = #tpu.dot_dimension_numbers<[1], [0], [0], [1], [0, 0, 1, 1], [], []>} : vector<144x16xbf16>, vector<16x128xbf16>, vector<144x128xf32> -> vector<144x128xf32>
    %54 = arith.addf %48, %53 : vector<144x128xf32>
    %c0_63 = arith.constant 0 : index
    %c0_64 = arith.constant 0 : index
    %55 = vector.load %arg4[%c0_63, %c0_64] : memref<1x128xf32, #tpu.memory_space<vmem>>, vector<1x128xf32>
    %56 = vector.broadcast %55 : vector<1x128xf32> to vector<144x128xf32>
    %57 = arith.addf %54, %56 : vector<144x128xf32>
    %cst_65 = arith.constant 0.000000e+00 : f32
    %58 = vector.broadcast %cst_65 : f32 to vector<144x128xf32>
    %59 = arith.maximumf %57, %58 : vector<144x128xf32>
    %c0_66 = arith.constant 0 : index
    %c0_67 = arith.constant 0 : index
    %c0_68 = arith.constant 0 : index
    %60 = vector.load %arg5[%c0_66, %c0_67, %c0_68] : memref<1x144x128xf32, #tpu.memory_space<vmem>>, vector<1x144x128xf32>
    %61 = vector.shape_cast %60 : vector<1x144x128xf32> to vector<144x128xf32>
    %62 = vector.shape_cast %59 : vector<144x128xf32> to vector<1x144x128xf32>
    tpu.vector_store %arg5[%c0_66, %c0_67, %c0_68], %62 {strides = array<i32>} : memref<1x144x128xf32, #tpu.memory_space<vmem>>, vector<1x144x128xf32>,
    return
  }
  func.func @transform_0(%arg0: i32, %arg1: i32) -> (i32, i32, i32) {
    %c0_i32 = arith.constant 0 : i32
    %c0_i32_0 = arith.constant 0 : i32
    %c0_i32_1 = arith.constant 0 : i32
    return %arg1, %c0_i32, %c0_i32_0 : i32, i32, i32
  }
  func.func @transform_1(%arg0: i32, %arg1: i32) -> (i32, i32, i32, i32) {
    %c0_i32 = arith.constant 0 : i32
    %c0_i32_0 = arith.constant 0 : i32
    %c0_i32_1 = arith.constant 0 : i32
    %c0_i32_2 = arith.constant 0 : i32
    return %c0_i32, %c0_i32_0, %c0_i32_1, %arg0 : i32, i32, i32, i32
  }
  func.func @transform_2(%arg0: i32, %arg1: i32) -> (i32, i32) {
    %c0_i32 = arith.constant 0 : i32
    %c0_i32_0 = arith.constant 0 : i32
    return %c0_i32, %arg0 : i32, i32
  }
  func.func @transform_3(%arg0: i32, %arg1: i32) -> (i32, i32, i32) {
    %c0_i32 = arith.constant 0 : i32
    %c0_i32_0 = arith.constant 0 : i32
    return %arg1, %c0_i32, %arg0 : i32, i32, i32
  }
}

</mosaic_0001>

<bundles_post_ra>
// kernel: tpu_custom_call.1
= control target key start
LH: loop header
LB: loop body
LE: loop exit
PB: predicated region body
PF: predicated region fallthrough
CT: control target
= control target key end

     0   :  { %8 = vsyncpa [#allocation3], 0  ;;  %s4169_s0 = inlined_call_operand.vmem [shape: bf16[2,184,16], index: 0, kind: input, shape index: {}]   ;;  %s4170_s1 = inlined_call_operand.vmem [shape: bf16[3,3,16,128], index: 1, kind: input, shape index: {}]   ;;  %s4171_s2 = inlined_call_operand.vmem [shape: f32[1,128], index: 2, kind: input, shape index: {}]   ;;  %s4172_s3 = inlined_call_operand.hbm [shape: f32[2,144,128], index: 3, kind: output, shape index: {}]  }
   0x1   :  { %10 = vsyncpa [#allocation3 + $0x1], 0  ;;  %s3232_s12 = smov 0   ;;  %s3234_s13 = smov 0  }
   0x2   :  { %s3236_s14 = smov 0   ;;  %s3238_s15 = smov 0  }
   0x3   :  { %s3240_s16 = smov 0   ;;  %s3242_s17 = smov 0  }
   0x4 LB: > { %s2402_s18 = sadd.s32 4294967295, %s3205_s17   ;;  %s2403_s19 = sadd.s32 4294967294, %s3205_s17   ;;  %s3205_s17 = sphi %s3242_s17, %s16_s17   ;;  %s3201_s16 = sphi %s3240_s16, %s4179_s16   ;;  %s3197_s15 = sphi %s3238_s15, %s4178_s15   ;;  %s3193_s14 = sphi %s3236_s14, %s4177_s14   ;;  %s3189_s13 = sphi %s3234_s13, %s4176_s13   ;;  %s3185_s12 = sphi %s3232_s12, %s4175_s12  }
   0x5   : > { %s25_s20 = sadd.s32 1, %s3201_s16  ;;  %s115_s21 = sadd.s32 1, %s3193_s14 }
   0x6   : > { %p26_p0 = scmp.ge.s32.totalorder %s25_s20, 2  ;;  %p125_p1 = scmp.ne.s32.totalorder %s3193_s14, %s3189_s13 }
   0x7   : > { %p126_p2 = scmp.eq.s32.totalorder %s2402_s18, 1  ;;  %p131_p3 = scmp.ne.s32.totalorder %s3189_s13, %s3185_s12 }
   0x8   : > { %s4181_s20 = smov (%p26_p0, %s25_s20), 0  ;;  %p132_p5 = scmp.eq.s32.totalorder %s2403_s19, 1 }
   0x9   : > { %p3272_p4 = por %p126_p2, %p125_p1  ;;  %s110_s23 = ssub.s32 %s3201_s16, %s4181_s20 }
   0xa   : > { %p2408_p6 = scmp.ge.s32.totalorder %s3205_s17, 1  ;;  %p113_p7 = scmp.eq.s32.totalorder %s110_s23, 0 }
   0xb   : > { %p3279_p8 = por %p132_p5, %p131_p3  ;;  %p171_p9 = scmp.lt.s32.totalorder %s3205_s17, 3 }
   0xc   : > { %s3285_s25 = scalar_select %p113_p7, %s3193_s14, %s115_s21  }
   0xd   : > { %p172_p10 = pnand %p2408_p6, %p171_p9 }
   0xe   : > { %v3067_v0 = vld [vmem:[%s4170_s1 + $0x8] sm:$0xff] (!%p172_p10)   ;;  %v3207_v1 = vmov (!%p172_p10), 0.0   ;;  %p202_p11 = scmp.lt.s32.totalorder (!%p172_p10), %s3197_s15, 1  ;;  %vm3208_vm0 = vmmov (!%p172_p10), 0   ;;  %vm287_vm1 = vsmask.f32 (!%p172_p10), 7424 }
   0xf   : > { %175 = sbr.rel (%p172_p10) target bundleno = 592 (0x250), region = 32  ;;  %2661 = vmatprep.subr.bf16.mxu0 (!%p172_p10), %v3207_v1  ;;  %3003 = vmatprep.subr.bf16.mxu1 (!%p172_p10), %v3207_v1  ;;  %vm370_vm2 = vcmask (!%p172_p10), 130048   ;;  %v3072_v18 = vld [vmem:[%s4170_s1 + $0x10] sm:$0xff] (!%p172_p10)   ;;  %v3073_v26 = vld [vmem:[%s4170_s1] sm:$0xff] (!%p172_p10)   ;;  %vm639_vm3 = vcmask (!%p172_p10), 1046528   ;;  %s3209_s26 = smov (!%p172_p10), [#allocation2]  }
  0x10   : > { %2662 = vmatpush3.bf16.msra.mxu0 (!%p172_p10), %v3067_v0  ;;  %3004 = vmatpush3.bf16.msra.mxu1 (!%p172_p10), %v3067_v0  ;;  %s3007_s10 = smul.u32 (!%p172_p10), 2304, %s3197_s15  ;;  %s3131_s27 = sshll.u32 (!%p172_p10), %s3209_s26, 4  ;;  %s3132_s27 = int_to_ptr.vmem [resolvable:$false] %s3131_s27 }
  0x11   : > { %2663 = vmatprep.mubr.msk.bf16.mxu0 (!%p172_p10), %vm3208_vm0, %v3207_v1  ;;  %2683 = vmatprep.mubr.msk.bf16.mxu1 (!%p172_p10), %vm3208_vm0, %v3207_v1 }
  0x12   : > { %2737 = vmatprep.subr.bf16.mxu0 (!%p172_p10), %v3207_v1  ;;  %2699 = vmatprep.subr.bf16.mxu1 (!%p172_p10), %v3207_v1  ;;  %s4118_s21 = scalar_lea.hbm (!%p172_p10), %s4172_s3, %s3007_s10 }
  0x16   : > { %s203_s28 = scalar_select %p202_p11, %s3197_s15, 1 }
  0x18   : > { %s3006_s29 = smul.u32 92, %s203_s28  ;;  %s3133_s28 = scalar_lea.vmem %s3132_s27, 4608 }
  0x1a   : > { %s3303_s5 = scalar_lea.vmem %s4169_s0, %s3006_s29 }
  0x1b   : > { %v215_v2 = vld [vmem:[%s3303_s5] sm:$0xf]  ;;  %v3307_v3 = vld [vmem:[%s3303_s5 + $0x4] sm:$0xf]  ;;  %v3313_v5 = vld [vmem:[%s3303_s5 + $0x8] sm:$0xff]  }
  0x1c   : > { %v3310_v4 = vcombine.low %v215_v2, %v3307_v3  ;;  %v296_v8 = vshll.u32 %v3313_v5, 16  ;;  %v3319_v9 = vld [vmem:[%s3303_s5 + $0x28] sm:$0xff]   ;;  %v3322_v10 = vld [vmem:[%s3303_s5 + $0x30] sm:$0xff]   ;;  %v3328_v12 = vld [vmem:[%s3303_s5 + $0x38] sm:$0xff]   ;;  %v300_v19 = vshrl.u32 %v3313_v5, 16 }
  0x1d   : > { %v3325_v11 = vld [vmem:[%s3303_s5 + $0x10] sm:$0xff]   ;;  %v328_v15 = vshll.u32 %v3319_v9, 16  ;;  %v332_v16 = vshrl.u32 %v3319_v9, 16  ;;  %v336_v17 = vshll.u32 %v3322_v10, 16  ;;  %v340_v27 = vshrl.u32 %v3322_v10, 16  ;;  %v3352_v32 = vld [vmem:[%s3303_s5 + $0x18] sm:$0xff]  }
  0x1e   : > { %v289_v6 = vshrl.u32 %v3310_v4, 16  ;;  %v291_v7 = vshll.u32 %v3310_v4, 16  ;;  %v298_v14 = vrot.slane %v296_v8, 1  ;;  %v304_v22 = vshll.u32 %v3325_v11, 16  ;;  %v3359_v35 = vld [vmem:[%s3303_s5 + $0x40] sm:$0xff]   ;;  %v3080_v2 = vld [vmem:[%s4170_s1 + $0x18] sm:$0xff]  }
  0x1f   : > { %v3337_v21 = vrot.slane %v328_v15, 1  ;;  %v338_v23 = vrot.slane %v336_v17, 1  ;;  %v344_v28 = vshll.u32 %v3328_v12, 16  ;;  %v308_v37 = vshrl.u32 %v3325_v11, 16  ;;  %v3372_v44 = vld [vmem:[%s3303_s5 + $0x20] sm:$0xff]  }
  0x20   : > { %v293_v13 = vrot.slane %v291_v7, 1  ;;  %v302_v30 = vor.u32 %v300_v19, %v298_v14  ;;  %v306_v31 = vrot.slane %v304_v22, 1  ;;  %v312_v38 = vshll.u32 %v3352_v32, 16  ;;  %v3375_v45 = vld [vmem:[%s3303_s5 + $0x48] ss:$0 sps:$4 sm:$0x11]  }
  0x21   : > { %v334_v25 = vor.u32 %v332_v16, %v3337_v21  ;;  %v342_v33 = vor.u32 %v340_v27, %v338_v23  ;;  %v346_v34 = vrot.slane %v344_v28, 1  ;;  %v348_v40 = vshrl.u32 %v3328_v12, 16  ;;  %v632_v61 = vld [vmem:[%s3303_s5] sm:$0xe]  ;;  %v3434_v16 = vld [vmem:[%s3303_s5 + $0x10] sm:$0xff]  }
  0x22   : > { %v294_v20 = vor.u32 %v293_v13, %v289_v6  ;;  %v307_v36 = vsel %vm287_vm1, %v302_v30, %v306_v31  ;;  %v352_v41 = vshll.u32 %v3359_v35, 16  ;;  %v310_v42 = vor.u32 %v308_v37, %v306_v31  ;;  %v1038_v13 = vld [vmem:[%s3303_s5 + $0xc] sm:$0xf] }
  0x23   : > { %v339_v29 = vsel %vm287_vm1, %v334_v25, %v338_v23  ;;  %v347_v39 = vsel %vm287_vm1, %v342_v33, %v346_v34  ;;  %v314_v43 = vrot.slane %v312_v38, 1  ;;  %v350_v46 = vor.u32 %v348_v40, %v346_v34  ;;  %v3477_v30 = vld [vmem:[%s3303_s5 + $0x28] sm:$0xff]  }
  0x24   : > { %v299_v24 = vsel %vm287_vm1, %v294_v20, %v298_v14  ;;  %2684 = vmatmul.mubr.msk.bf16.vlgmr.msra.gmra.mrb[0].mxu1 %vm370_vm2, %v339_v29  ;;  %v354_v47 = vrot.slane %v352_v41, 1  ;;  %v316_v49 = vshrl.u32 %v3352_v32, 16  ;;  %v320_v50 = vshll.u32 %v3372_v44, 16  ;;  %v1339_v14 = vld [vmem:[%s3303_s5 + $0x8] sm:$0xe]  ;;  %v3442_v20 = vld [vmem:[%s3303_s5 + $0x18] sm:$0xff]  }
  0x25   : > { %2664 = vmatmul.mubr.msk.bf16.vlgmr.msra.gmra.mrb[0].mxu0 %vm370_vm2, %v299_v24  ;;  %2700 = vmatpush3.bf16.msra.mxu1 %v3073_v26  ;;  %v315_v48 = vsel %vm287_vm1, %v310_v42, %v314_v43  ;;  %v356_v52 = vshrl.u32 %v3359_v35, 16  ;;  %v360_v53 = vshll.u32 %v3375_v45, 16  ;;  %v324_v59 = vshrl.u32 %v3372_v44, 16  ;;  %v3461_v26 = vld [vmem:[%s3303_s5 + $0x20] sm:$0xff]   ;;  %v1037_v42 = vld [vmem:[%s3303_s5 + $0x8] sm:$0xf] }
  0x26   : > { %2738 = vmatpush3.bf16.msra.mxu0 %v3072_v18  ;;  %2667 = vmatprep.mubr.msk.bf16.mxu0 %vm3208_vm0, %v3207_v1  ;;  %v355_v51 = vsel %vm287_vm1, %v350_v46, %v354_v47  ;;  %v318_v54 = vor.u32 %v316_v49, %v314_v43  ;;  %v322_v55 = vrot.slane %v320_v50, 1  ;;  %v2444_v63 = vcombine.low %v632_v61, %v3307_v3  ;;  %v3082_v3 = vld [vmem:[%s4170_s1 + $0x20] sm:$0xff]   ;;  %v3083_v50 = vld [vmem:[%s3303_s5 + $0x8] sm:$0xff]  }
  0x27   : > { %2813 = vmatprep.subr.bf16.mxu0 %v3207_v1  ;;  %2687 = vmatprep.mubr.msk.bf16.mxu1 %vm3208_vm0, %v3207_v1  ;;  %v358_v56 = vor.u32 %v356_v52, %v354_v47  ;;  %v362_v57 = vrot.slane %v360_v53, 1  ;;  %v641_v7 = vrot.slane %v3313_v5, 1  ;;  %v2500_v17 = vcombine.low %v1339_v14, %v1038_v13  ;;  %v3088_v53 = vld [vmem:[%s4170_s1 + $0x30] sm:$0xff]  }
  0x28   : > { %2775 = vmatprep.subr.bf16.mxu1 %v3207_v1  ;;  %v323_v58 = vsel %vm287_vm1, %v318_v54, %v322_v55  ;;  %v326_v62 = vor.u32 %v324_v59, %v322_v55  ;;  %v640_v6 = vrot.slane %v2444_v63, 1  ;;  %v1347_v19 = vrot.slane %v3434_v16, 1 }
  0x29   : > { %v363_v60 = vsel %vm287_vm1, %v358_v56, %v362_v57  ;;  %v1346_v18 = vrot.slane %v2500_v17, 1  ;;  %v1349_v22 = vrot.slane %v3442_v20, 1  ;;  %v647_v25 = vrot.slane %v3372_v44, 1  ;;  %v3085_v56 = vld [vmem:[%s3303_s5 + $0x10] sm:$0xff]  }
  0x2a   : > { %v331_v0 = vsel %vm287_vm1, %v326_v62, %v3337_v21  ;;  %v642_v8 = vsel %vm639_vm3, %v640_v6, %v641_v7  ;;  %v649_v29 = vrot.slane %v3319_v9, 1  ;;  %v1353_v31 = vrot.slane %v3477_v30, 1  ;;  %v3089_v62 = vld [vmem:[%s3303_s5 + $0x18] sm:$0xff]  }
  0x2b   : > { %v3445_v21 = vsel %vm639_vm3, %v1346_v18, %v1347_v19  ;;  %v3454_v24 = vsel %vm639_vm3, %v1347_v19, %v1349_v22  ;;  %v651_v34 = vrot.slane %v3322_v10, 1  ;;  %v653_v40 = vrot.slane %v3328_v12, 1  ;;  %v3588_v19 = vld [vmem:[%s3303_s5 + $0x38] sm:$0xff]  }
  0x2c   : > { %2688 = vmatmul.mubr.msk.bf16.gmra.mrb[4].mxu1 %vm370_vm2, %v347_v39  ;;  %v655_v41 = vrot.slane %v3359_v35, 1  ;;  %v2478_v43 = vcombine.low %v1037_v42, %v1038_v13  ;;  %v1115_v49 = vshll.u32 %v3434_v16, 16  ;;  %v1119_v54 = vshrl.u32 %v3434_v16, 16  ;;  %v3093_v16 = vld [vmem:[%s3303_s5 + $0x28] sm:$0xff]   ;;  %v3099_v42 = vld [vmem:[%s3303_s5 + $0x40] sm:$0xff]  }
  0x2d   : > { %2668 = vmatmul.mubr.msk.bf16.gmra.mrb[4].mxu0 %vm370_vm2, %v307_v36  ;;  %2691 = vmatprep.mubr.msk.bf16.mxu1 %vm3208_vm0, %v3207_v1  ;;  %v3493_v36 = vld [vmem:[%s3303_s5 + $0x30] sm:$0xff]   ;;  %v652_v38 = vsel %vm639_vm3, %v649_v29, %v651_v34  ;;  %v1123_v55 = vshll.u32 %v3442_v20, 16  ;;  %v1131_v61 = vshll.u32 %v3461_v26, 16  ;;  %v1135_v6 = vshrl.u32 %v3461_v26, 16 }
  0x2e   : > { %2671 = vmatprep.mubr.msk.bf16.mxu0 %vm3208_vm0, %v3207_v1  ;;  %v1355_v37 = vrot.slane %v3493_v36, 1  ;;  %v1110_v46 = vshll.u32 %v2478_v43, 16  ;;  %v1108_v47 = vshrl.u32 %v2478_v43, 16  ;;  %v1143_v14 = vshrl.u32 %v3477_v30, 16 }
  0x30   : > { %v3504_v39 = vsel %vm639_vm3, %v1353_v31, %v1355_v37 }
  0x34   : > { %2692 = vmatmul.mubr.msk.bf16.gmra.mrb[8].mxu1 %vm370_vm2, %v355_v51  ;;  %v3084_v51 = vld [vmem:[%s4170_s1 + $0x28] sm:$0xff]  }
  0x35   : > { %2672 = vmatmul.mubr.msk.bf16.gmra.mrb[8].mxu0 %vm370_vm2, %v315_v48  ;;  %2695 = vmatprep.mubr.msk.bf16.mxu1 %vm3208_vm0, %v3207_v1  ;;  %v1112_v48 = vrot.slane %v1110_v46, 1 }
  0x36   : > { %2675 = vmatprep.mubr.msk.bf16.mxu0 %vm3208_vm0, %v3207_v1 }
  0x3c   : > { %2696 = vmatmul.mubr.msk.bf16.gmra.mrb[12].mxu1 %vm370_vm2, %v363_v60  ;;  %v1127_v60 = vshrl.u32 %v3442_v20, 16  ;;  %v1151_v20 = vshrl.u32 %v3493_v36, 16 }
  0x3d   : > { %2676 = vmatmul.mubr.msk.bf16.gmra.mrb[12].mxu0 %vm370_vm2, %v323_v58  ;;  %2701 = vmatprep.mubr.msk.bf16.mxu1 %vm3208_vm0, %v3207_v1  ;;  %v1125_v58 = vrot.slane %v1123_v55, 1  ;;  %v3111_v55 = vld [vmem:[%s3303_s5 + $0x30] sm:$0xff]  }
  0x3e   : > { %2679 = vmatprep.mubr.msk.bf16.mxu0 %vm3208_vm0, %v3207_v1 }
  0x3f   : > { %v1129_v63 = vor.u32 %v1127_v60, %v1125_v58 }
  0x44   : > { %2702 = vmatmul.mubr.msk.bf16.vlgmr.msra.gmra.mrb[16].mxu1 %vm370_vm2, %v3310_v4  ;;  %v643_v4 = vrot.slane %v3325_v11, 1 }
  0x45   : > { %2680 = vmatmul.mubr.msk.bf16.gmra.mrb[16].mxu0 %vm370_vm2, %v331_v0  ;;  %2776 = vmatpush3.bf16.msra.mxu1 %v3080_v2  ;;  %v1133_v0 = vrot.slane %v1131_v61, 1 }
  0x46   : > { %2739 = vmatprep.mubr.msk.bf16.mxu0 %vm3208_vm0, %v3207_v1  ;;  %2705 = vmatprep.mubr.msk.bf16.mxu1 %vm3208_vm0, %v3207_v1  ;;  %v644_v15 = vsel %vm639_vm3, %v641_v7, %v643_v4  ;;  %v1139_v7 = vshll.u32 %v3477_v30, 16 }
  0x47   : > { %2851 = vmatprep.subr.bf16.mxu1 %v3207_v1  ;;  %v1134_v2 = vsel %vm287_vm1, %v1129_v63, %v1133_v0 }
  0x4c   : > { %2706 = vmatmul.mubr.msk.bf16.gmra.mrb[20].mxu1 %vm370_vm2, %v3313_v5  ;;  %v645_v5 = vrot.slane %v3352_v32, 1 }
  0x4d   : > { %2740 = vmatmul.mubr.msk.bf16.vlgmr.msra.gmra.mrb[20].mxu0 %vm370_vm2, %v642_v8  ;;  %2709 = vmatprep.mubr.msk.bf16.mxu1 %vm3208_vm0, %v3207_v1  ;;  %v1137_v8 = vor.u32 %v1135_v6, %v1133_v0 }
  0x4e   : > { %2814 = vmatpush3.bf16.msra.mxu0 %v3082_v3  ;;  %2743 = vmatprep.mubr.msk.bf16.mxu0 %vm3208_vm0, %v3207_v1  ;;  %v646_v23 = vsel %vm639_vm3, %v643_v4, %v645_v5  ;;  %v648_v27 = vsel %vm639_vm3, %v645_v5, %v647_v25  ;;  %v3091_v3 = vld [vmem:[%s3303_s5 + $0x20] sm:$0xff]   ;;  %v1141_v4 = vrot.slane %v1139_v7, 1 }
  0x4f   : > { %2889 = vmatprep.subr.bf16.mxu0 %v3207_v1 }
  0x50   : > { %v1142_v13 = vsel %vm287_vm1, %v1137_v8, %v1141_v4  ;;  %v1145_v17 = vor.u32 %v1143_v14, %v1141_v4 }
  0x54   : > { %2710 = vmatmul.mubr.msk.bf16.gmra.mrb[24].mxu1 %vm370_vm2, %v3325_v11  ;;  %v1351_v11 = vrot.slane %v3461_v26, 1 }
  0x55   : > { %2744 = vmatmul.mubr.msk.bf16.gmra.mrb[24].mxu0 %vm370_vm2, %v644_v15  ;;  %2713 = vmatprep.mubr.msk.bf16.mxu1 %vm3208_vm0, %v3207_v1  ;;  %v1147_v15 = vshll.u32 %v3493_v36, 16  ;;  %v3112_v36 = vld [vmem:[%s3303_s5 + $0x38] sm:$0xff]  }
  0x56   : > { %2747 = vmatprep.mubr.msk.bf16.mxu0 %vm3208_vm0, %v3207_v1  ;;  %v3470_v28 = vsel %vm639_vm3, %v1349_v22, %v1351_v11  ;;  %v3486_v33 = vsel %vm639_vm3, %v1351_v11, %v1353_v31  ;;  %v1155_v22 = vshll.u32 %v3588_v19, 16  ;;  %v3601_v11 = vld [vmem:[%s3303_s5 + $0x40] sm:$0xff]   ;;  %v3097_v31 = vld [vmem:[%s3303_s5 + $0x38] sm:$0xff]  }
  0x57   : > { %v1149_v18 = vrot.slane %v1147_v15, 1  ;;  %v1163_v30 = vshll.u32 %v3601_v11, 16  ;;  %v1359_v63 = vrot.slane %v3601_v11, 1 }
  0x58   : > { %v1157_v26 = vrot.slane %v1155_v22, 1 }
  0x59   : > { %v1150_v5 = vsel %vm287_vm1, %v1145_v17, %v1149_v18  ;;  %v1743_v17 = vld [vmem:[%s3303_s5 + $0x10] sm:$0xf] }
  0x5c   : > { %2714 = vmatmul.mubr.msk.bf16.gmra.mrb[28].mxu1 %vm370_vm2, %v3352_v32  ;;  %v650_v32 = vsel %vm639_vm3, %v647_v25, %v649_v29  ;;  %v1153_v25 = vor.u32 %v1151_v20, %v1149_v18  ;;  %v1159_v29 = vshrl.u32 %v3588_v19, 16  ;;  %v1744_v18 = vld [vmem:[%s3303_s5 + $0x14] sm:$0xf] }
  0x5d   : > { %2748 = vmatmul.mubr.msk.bf16.gmra.mrb[28].mxu0 %vm370_vm2, %v646_v23  ;;  %2717 = vmatprep.mubr.msk.bf16.mxu1 %vm3208_vm0, %v3207_v1  ;;  %v3095_v23 = vld [vmem:[%s3303_s5 + $0x30] sm:$0xff]  }
  0x5e   : > { %2751 = vmatprep.mubr.msk.bf16.mxu0 %vm3208_vm0, %v3207_v1 }
  0x64   : > { %2718 = vmatmul.mubr.msk.bf16.gmra.mrb[32].mxu1 %vm370_vm2, %v3372_v44  ;;  %v657_v44 = vrot.slane %v3375_v45, 1  ;;  %v1117_v45 = vrot.slane %v1115_v49, 1 }
  0x65   : > { %2752 = vmatmul.mubr.msk.bf16.gmra.mrb[32].mxu0 %vm370_vm2, %v648_v27  ;;  %2721 = vmatprep.mubr.msk.bf16.mxu1 %vm3208_vm0, %v3207_v1  ;;  %v1158_v27 = vsel %vm287_vm1, %v1153_v25, %v1157_v26 }
  0x66   : > { %2755 = vmatprep.mubr.msk.bf16.mxu0 %vm3208_vm0, %v3207_v1  ;;  %v1121_v57 = vor.u32 %v1119_v54, %v1117_v45  ;;  %v1357_v54 = vrot.slane %v3588_v19, 1 }
  0x68   : > { %v1126_v59 = vsel %vm287_vm1, %v1121_v57, %v1125_v58  ;;  %v1360_v8 = vsel %vm639_vm3, %v1357_v54, %v1359_v63 }
  0x6c   : > { %2722 = vmatmul.mubr.msk.bf16.gmra.mrb[36].mxu1 %vm370_vm2, %v3319_v9  ;;  %v654_v9 = vsel %vm639_vm3, %v651_v34, %v653_v40  ;;  %v1165_v34 = vrot.slane %v1163_v30, 1  ;;  %v3747_v30 = vld [vmem:[%s3303_s5 + $0x18] sm:$0xff]  }
  0x6d   : > { %2756 = vmatmul.mubr.msk.bf16.gmra.mrb[36].mxu0 %vm370_vm2, %v650_v32  ;;  %2725 = vmatprep.mubr.msk.bf16.mxu1 %vm3208_vm0, %v3207_v1  ;;  %v1161_v32 = vor.u32 %v1159_v29, %v1157_v26  ;;  %v2534_v26 = vcombine.low %v1743_v17, %v1744_v18 }
  0x6e   : > { %2759 = vmatprep.mubr.msk.bf16.mxu0 %vm3208_vm0, %v3207_v1 }
  0x74   : > { %2726 = vmatmul.mubr.msk.bf16.gmra.mrb[40].mxu1 %vm370_vm2, %v3322_v10  ;;  %v656_v10 = vsel %vm639_vm3, %v653_v40, %v655_v41  ;;  %v1166_v40 = vsel %vm287_vm1, %v1161_v32, %v1165_v34 }
  0x75   : > { %2760 = vmatmul.mubr.msk.bf16.gmra.mrb[40].mxu0 %vm370_vm2, %v652_v38  ;;  %2729 = vmatprep.mubr.msk.bf16.mxu1 %vm3208_vm0, %v3207_v1  ;;  %v3614_v38 = vld [vmem:[%s3303_s5 + $0x48] sm:$0xff]  }
  0x76   : > { %2763 = vmatprep.mubr.msk.bf16.mxu0 %vm3208_vm0, %v3207_v1  ;;  %v1361_v14 = vrot.slane %v3614_v38, 1 }
  0x78   : > { %v1362_v25 = vsel %vm639_vm3, %v1359_v63, %v1361_v14 }
  0x7c   : > { %2730 = vmatmul.mubr.msk.bf16.gmra.mrb[44].mxu1 %vm370_vm2, %v3328_v12  ;;  %v658_v12 = vsel %vm639_vm3, %v655_v41, %v657_v44  ;;  %v1171_v41 = vshll.u32 %v3614_v38, 16  ;;  %v3627_v44 = vld [vmem:[%s3303_s5 + $0x50] ss:$0 sps:$4 sm:$0x11]  }
  0x7d   : > { %2764 = vmatmul.mubr.msk.bf16.gmra.mrb[44].mxu0 %vm370_vm2, %v654_v9  ;;  %2733 = vmatprep.mubr.msk.bf16.mxu1 %vm3208_vm0, %v3207_v1  ;;  %v1167_v9 = vshrl.u32 %v3601_v11, 16  ;;  %v1363_v29 = vrot.slane %v3627_v44, 1 }
  0x7e   : > { %2767 = vmatprep.mubr.msk.bf16.mxu0 %vm3208_vm0, %v3207_v1  ;;  %v1173_v43 = vrot.slane %v1171_v41, 1 }
  0x84   : > { %2734 = vmatmul.mubr.msk.bf16.gmra.mrb[48].mxu1 %vm370_vm2, %v3359_v35  ;;  %v1113_v35 = vor.u32 %v1112_v48, %v1108_v47  ;;  %v1179_v47 = vshll.u32 %v3627_v44, 16  ;;  %v3101_v48 = vld [vmem:[%s3303_s5 + $0x48] sm:$0xff]  }
  0x85   : > { %2768 = vmatmul.mubr.msk.bf16.gmra.mrb[48].mxu0 %vm370_vm2, %v656_v10  ;;  %2777 = vmatprep.mubr.msk.bf16.mxu1 %vm3208_vm0, %v3207_v1  ;;  %v1169_v10 = vor.u32 %v1167_v9, %v1165_v34  ;;  %v3114_v34 = vld [vmem:[%s3303_s5 + $0x48] sm:$0xff]  }
  0x86   : > { %2771 = vmatprep.mubr.msk.bf16.mxu0 %vm3208_vm0, %v3207_v1  ;;  %v1118_v52 = vsel %vm287_vm1, %v1113_v35, %v1117_v45  ;;  %v3105_v35 = vld [vmem:[%s4170_s1 + $0x38] sm:$0xff]   ;;  %v3106_v45 = vld [vmem:[%s3303_s5 + $0x10] sm:$0xff]  }
  0x87   : > { %v1174_v46 = vsel %vm287_vm1, %v1169_v10, %v1173_v43  ;;  %v1364_v10 = vsel %vm639_vm3, %v1361_v14, %v1363_v29 }
  0x8c   : > { %2778 = vmatmul.mubr.msk.bf16.vlgmr.msra.gmra.mrb[52].mxu1 %vm370_vm2, %v3083_v50  ;;  %v1181_v50 = vrot.slane %v1179_v47, 1  ;;  %v2045_v47 = vld [vmem:[%s3303_s5 + $0x10] sm:$0xe] }
  0x8d   : > { %2772 = vmatmul.mubr.msk.bf16.gmra.mrb[52].mxu0 %vm370_vm2, %v658_v12  ;;  %2852 = vmatpush3.bf16.msra.mxu1 %v3084_v51  ;;  %v1175_v12 = vshrl.u32 %v3614_v38, 16 }
  0x8e   : > { %2815 = vmatprep.mubr.msk.bf16.mxu0 %vm3208_vm0, %v3207_v1  ;;  %2781 = vmatprep.mubr.msk.bf16.mxu1 %vm3208_vm0, %v3207_v1 }
  0x8f   : > { %2927 = vmatprep.subr.bf16.mxu1 %v3207_v1  ;;  %v1177_v49 = vor.u32 %v1175_v12, %v1173_v43  ;;  %v1814_v43 = vshrl.u32 %v2534_v26, 16 }
  0x91   : > { %v1182_v51 = vsel %vm287_vm1, %v1177_v49, %v1181_v50 }
  0x94   : > { %2782 = vmatmul.mubr.msk.bf16.gmra.mrb[56].mxu1 %vm370_vm2, %v3085_v56 }
  0x95   : > { %2816 = vmatmul.mubr.msk.bf16.vlgmr.msra.gmra.mrb[56].mxu0 %vm370_vm2, %v1118_v52  ;;  %2785 = vmatprep.mubr.msk.bf16.mxu1 %vm3208_vm0, %v3207_v1  ;;  %v3107_v52 = vld [vmem:[%s4170_s1 + $0x40] sm:$0xff]  }
  0x96   : > { %2890 = vmatpush3.bf16.msra.mxu0 %v3088_v53  ;;  %2819 = vmatprep.mubr.msk.bf16.mxu0 %vm3208_vm0, %v3207_v1  ;;  %v3109_v53 = vld [vmem:[%s3303_s5 + $0x20] sm:$0xff]  }
  0x97   : > { %2965 = vmatprep.subr.bf16.mxu0 %v3207_v1 }
  0x9c   : > { %2786 = vmatmul.mubr.msk.bf16.gmra.mrb[60].mxu1 %vm370_vm2, %v3089_v62 }
  0x9d   : > { %2820 = vmatmul.mubr.msk.bf16.gmra.mrb[60].mxu0 %vm370_vm2, %v1126_v59  ;;  %2789 = vmatprep.mubr.msk.bf16.mxu1 %vm3208_vm0, %v3207_v1 }
  0x9e   : > { %2823 = vmatprep.mubr.msk.bf16.mxu0 %vm3208_vm0, %v3207_v1 }
  0xa4   : > { %2790 = vmatmul.mubr.msk.bf16.gmra.mrb[64].mxu1 %vm370_vm2, %v3091_v3 }
  0xa5   : > { %2824 = vmatmul.mubr.msk.bf16.gmra.mrb[64].mxu0 %vm370_vm2, %v1134_v2  ;;  %2793 = vmatprep.mubr.msk.bf16.mxu1 %vm3208_vm0, %v3207_v1 }
  0xa6   : > { %2827 = vmatprep.mubr.msk.bf16.mxu0 %vm3208_vm0, %v3207_v1 }
  0xac   : > { %2794 = vmatmul.mubr.msk.bf16.gmra.mrb[68].mxu1 %vm370_vm2, %v3093_v16  ;;  %v3113_v16 = vld [vmem:[%s3303_s5 + $0x40] sm:$0xff]  }
  0xad   : > { %2828 = vmatmul.mubr.msk.bf16.gmra.mrb[68].mxu0 %vm370_vm2, %v1142_v13  ;;  %2797 = vmatprep.mubr.msk.bf16.mxu1 %vm3208_vm0, %v3207_v1 }
  0xae   : > { %2831 = vmatprep.mubr.msk.bf16.mxu0 %vm3208_vm0, %v3207_v1 }
  0xb4   : > { %2798 = vmatmul.mubr.msk.bf16.gmra.mrb[72].mxu1 %vm370_vm2, %v3095_v23 }
  0xb5   : > { %2832 = vmatmul.mubr.msk.bf16.gmra.mrb[72].mxu0 %vm370_vm2, %v1150_v5  ;;  %2801 = vmatprep.mubr.msk.bf16.mxu1 %vm3208_vm0, %v3207_v1 }
  0xb6   : > { %2835 = vmatprep.mubr.msk.bf16.mxu0 %vm3208_vm0, %v3207_v1 }
  0xbc   : > { %2802 = vmatmul.mubr.msk.bf16.gmra.mrb[76].mxu1 %vm370_vm2, %v3097_v31  ;;  %v1816_v31 = vshll.u32 %v2534_v26, 16 }
  0xbd   : > { %2836 = vmatmul.mubr.msk.bf16.gmra.mrb[76].mxu0 %vm370_vm2, %v1158_v27  ;;  %2805 = vmatprep.mubr.msk.bf16.mxu1 %vm3208_vm0, %v3207_v1 }
  0xbe   : > { %2839 = vmatprep.mubr.msk.bf16.mxu0 %vm3208_vm0, %v3207_v1  ;;  %v1818_v44 = vrot.slane %v1816_v31, 1 }
  0xc0   : > { %v1819_v49 = vor.u32 %v1818_v44, %v1814_v43 }
  0xc4   : > { %2806 = vmatmul.mubr.msk.bf16.gmra.mrb[80].mxu1 %vm370_vm2, %v3099_v42 }
  0xc5   : > { %2840 = vmatmul.mubr.msk.bf16.gmra.mrb[80].mxu0 %vm370_vm2, %v1166_v40  ;;  %2809 = vmatprep.mubr.msk.bf16.mxu1 %vm3208_vm0, %v3207_v1 }
  0xc6   : > { %2843 = vmatprep.mubr.msk.bf16.mxu0 %vm3208_vm0, %v3207_v1 }
  0xcc   : > { %2810 = vmatmul.mubr.msk.bf16.gmra.mrb[84].mxu1 %vm370_vm2, %v3101_v48 }
  0xcd   : > { %2844 = vmatmul.mubr.msk.bf16.gmra.mrb[84].mxu0 %vm370_vm2, %v1174_v46  ;;  %2853 = vmatprep.mubr.msk.bf16.mxu1 %vm3208_vm0, %v3207_v1  ;;  %v1821_v46 = vshll.u32 %v3747_v30, 16 }
  0xce   : > { %2847 = vmatprep.mubr.msk.bf16.mxu0 %vm3208_vm0, %v3207_v1 }
  0xcf   : > { %v1823_v50 = vrot.slane %v1821_v46, 1 }
  0xd4   : > { %2854 = vmatmul.mubr.msk.bf16.vlgmr.msra.gmra.mrb[88].mxu1 %vm370_vm2, %v3445_v21  ;;  %v3108_v21 = vld [vmem:[%s3303_s5 + $0x18] sm:$0xff]  }
  0xd5   : > { %2848 = vmatmul.mubr.msk.bf16.gmra.mrb[88].mxu0 %vm370_vm2, %v1182_v51  ;;  %2928 = vmatpush3.bf16.msra.mxu1 %v3105_v35  ;;  %v3768_v51 = vld [vmem:[%s3303_s5 + $0x20] sm:$0xff]  }
  0xd6   : > { %2891 = vmatprep.mubr.msk.bf16.mxu0 %vm3208_vm0, %v3207_v1  ;;  %2857 = vmatprep.mubr.msk.bf16.mxu1 %vm3208_vm0, %v3207_v1 }
  0xdc   : > { %2858 = vmatmul.mubr.msk.bf16.gmra.mrb[92].mxu1 %vm370_vm2, %v3454_v24  ;;  %v3110_v24 = vld [vmem:[%s3303_s5 + $0x28] sm:$0xff]  }
  0xdd   : > { %2892 = vmatmul.mubr.msk.bf16.vlgmr.msra.gmra.mrb[92].mxu0 %vm370_vm2, %v3106_v45  ;;  %2861 = vmatprep.mubr.msk.bf16.mxu1 %vm3208_vm0, %v3207_v1  ;;  %v3115_v45 = vld [vmem:[%s3303_s5 + $0x50] sm:$0xff]  }
  0xde   : > { %2966 = vmatpush3.bf16.msra.mxu0 %v3107_v52  ;;  %2895 = vmatprep.mubr.msk.bf16.mxu0 %vm3208_vm0, %v3207_v1 }
  0xe4   : > { %2862 = vmatmul.mubr.msk.bf16.gmra.mrb[96].mxu1 %vm370_vm2, %v3470_v28 }
  0xe5   : > { %2896 = vmatmul.mubr.msk.bf16.gmra.mrb[96].mxu0 %vm370_vm2, %v3108_v21  ;;  %2865 = vmatprep.mubr.msk.bf16.mxu1 %vm3208_vm0, %v3207_v1 }
  0xe6   : > { %2899 = vmatprep.mubr.msk.bf16.mxu0 %vm3208_vm0, %v3207_v1 }
  0xec   : > { %2866 = vmatmul.mubr.msk.bf16.gmra.mrb[100].mxu1 %vm370_vm2, %v3486_v33 }
  0xed   : > { %2900 = vmatmul.mubr.msk.bf16.gmra.mrb[100].mxu0 %vm370_vm2, %v3109_v53  ;;  %2869 = vmatprep.mubr.msk.bf16.mxu1 %vm3208_vm0, %v3207_v1  ;;  %v2556_v53 = vcombine.low %v2045_v47, %v1744_v18 }
  0xee   : > { %2903 = vmatprep.mubr.msk.bf16.mxu0 %vm3208_vm0, %v3207_v1 }
  0xf4   : > { %2870 = vmatmul.mubr.msk.bf16.gmra.mrb[104].mxu1 %vm370_vm2, %v3504_v39  ;;  %v1358_v39 = vsel %vm639_vm3, %v1355_v37, %v1357_v54 }
  0xf5   : > { %2904 = vmatmul.mubr.msk.bf16.gmra.mrb[104].mxu0 %vm370_vm2, %v3110_v24  ;;  %2873 = vmatprep.mubr.msk.bf16.mxu1 %vm3208_vm0, %v3207_v1 }
  0xf6   : > { %2907 = vmatprep.mubr.msk.bf16.mxu0 %vm3208_vm0, %v3207_v1 }
  0xf7   : > { %v3694_v57 = vpop.f32.mrb[0].mxu1 }
  0xf8   : > { %v3686_v28 = vpop.f32.mrb[0].mxu0  ;;  %v2685_v59 = vpop.f32.mrb[1].mxu1 }
  0xf9   : > { %v2665_v33 = vpop.f32.mrb[1].mxu0  ;;  %v3696_v60 = vpop.f32.mrb[2].mxu1  ;;  %v1825_v59 = vshrl.u32 %v3747_v30, 16 }
  0xfa   : > { %v3692_v56 = vpop.f32.mrb[2].mxu0  ;;  %v2686_v61 = vpop.f32.mrb[3].mxu1 }
  0xfb   : > { %v2666_v58 = vpop.f32.mrb[3].mxu0 }
  0xfc   : > { %2874 = vmatmul.mubr.msk.bf16.gmra.mrb[108].mxu1 %vm370_vm2, %v1358_v39  ;;  %v1824_v58 = vsel %vm287_vm1, %v1819_v49, %v1823_v50  ;;  %v1829_v39 = vshll.u32 %v3768_v51, 16 }
  0xfd   : > { %2908 = vmatmul.mubr.msk.bf16.gmra.mrb[108].mxu0 %vm370_vm2, %v3111_v55  ;;  %2877 = vmatprep.mubr.msk.bf16.mxu1 %vm3208_vm0, %v3207_v1 }
  0xfe   : > { %2911 = vmatprep.mubr.msk.bf16.mxu0 %vm3208_vm0, %v3207_v1 }
  0xff   : > { %v3713_v2 = vpop.f32.mrb[4].mxu1 }
 0x100   : > { %v3705_v62 = vpop.f32.mrb[4].mxu0  ;;  %v2689_v7 = vpop.f32.mrb[5].mxu1 }
 0x101   : > { %v2669_v0 = vpop.f32.mrb[5].mxu0  ;;  %v3715_v3 = vpop.f32.mrb[6].mxu1  ;;  %v1831_v7 = vrot.slane %v1829_v39, 1 }
 0x102   : > { %v3711_v37 = vpop.f32.mrb[6].mxu0  ;;  %v2690_v4 = vpop.f32.mrb[7].mxu1  ;;  %v2052_v0 = vrot.slane %v2556_v53, 1 }
 0x103   : > { %v2670_v6 = vpop.f32.mrb[7].mxu0 }
 0x104   : > { %2878 = vmatmul.mubr.msk.bf16.gmra.mrb[112].mxu1 %vm370_vm2, %v1360_v8  ;;  %v1827_v6 = vor.u32 %v1825_v59, %v1823_v50  ;;  %v3786_v8 = vld [vmem:[%s3303_s5 + $0x28] sm:$0xff]  }
 0x105   : > { %2912 = vmatmul.mubr.msk.bf16.gmra.mrb[112].mxu0 %vm370_vm2, %v3112_v36  ;;  %2881 = vmatprep.mubr.msk.bf16.mxu1 %vm3208_vm0, %v3207_v1  ;;  %v1837_v29 = vshll.u32 %v3786_v8, 16 }
 0x106   : > { %2915 = vmatprep.mubr.msk.bf16.mxu0 %vm3208_vm0, %v3207_v1  ;;  %v1832_v26 = vsel %vm287_vm1, %v1827_v6, %v1831_v7 }
 0x107   : > { %v3732_v5 = vpop.f32.mrb[8].mxu1 }
 0x108   : > { %v3722_v13 = vpop.f32.mrb[8].mxu0  ;;  %v2693_v22 = vpop.f32.mrb[9].mxu1 }
 0x109   : > { %v2673_v15 = vpop.f32.mrb[9].mxu0  ;;  %v3734_v23 = vpop.f32.mrb[10].mxu1 }
 0x10a   : > { %v3730_v19 = vpop.f32.mrb[10].mxu0  ;;  %v2694_v11 = vpop.f32.mrb[11].mxu1 }
 0x10b   : > { %v2674_v20 = vpop.f32.mrb[11].mxu0  ;;  %v1833_v11 = vshrl.u32 %v3768_v51, 16 }
 0x10c   : > { %2882 = vmatmul.mubr.msk.bf16.gmra.mrb[116].mxu1 %vm370_vm2, %v1362_v25 }
 0x10d   : > { %2916 = vmatmul.mubr.msk.bf16.gmra.mrb[116].mxu0 %vm370_vm2, %v3113_v16  ;;  %2885 = vmatprep.mubr.msk.bf16.mxu1 %vm3208_vm0, %v3207_v1 }
 0x10e   : > { %2919 = vmatprep.mubr.msk.bf16.mxu0 %vm3208_vm0, %v3207_v1 }
 0x10f   : > { %v3752_v40 = vpop.f32.mrb[12].mxu1 }
 0x110   : > { %v3741_v27 = vpop.f32.mrb[12].mxu0  ;;  %v2697_v41 = vpop.f32.mrb[13].mxu1 }
 0x111   : > { %v2677_v32 = vpop.f32.mrb[13].mxu0  ;;  %v3754_v42 = vpop.f32.mrb[14].mxu1  ;;  %v3806_v41 = vld [vmem:[%s3303_s5 + $0x30] sm:$0xff]  }
 0x112   : > { %v3750_v38 = vpop.f32.mrb[14].mxu0  ;;  %v2698_v12 = vpop.f32.mrb[15].mxu1 }
 0x113   : > { %v2678_v9 = vpop.f32.mrb[15].mxu0 }
 0x114   : > { %2886 = vmatmul.mubr.msk.bf16.gmra.mrb[120].mxu1 %vm370_vm2, %v1364_v10  ;;  %v1839_v9 = vrot.slane %v1837_v29, 1 }
 0x115   : > { %2920 = vmatmul.mubr.msk.bf16.gmra.mrb[120].mxu0 %vm370_vm2, %v3114_v34  ;;  %2929 = vmatprep.mubr.msk.bf16.mxu1 %vm3208_vm0, %v3207_v1  ;;  %v1835_v34 = vor.u32 %v1833_v11, %v1831_v7 }
 0x116   : > { %2923 = vmatprep.mubr.msk.bf16.mxu0 %vm3208_vm0, %v3207_v1 }
 0x117   : > { %v561_v52 = vpop.f32.mrb[16].mxu1 }
 0x118   : > { %v3763_v48 = vpop.f32.mrb[16].mxu0  ;;  %v562_v24 = vadd.f32 %v561_v52, %v3686_v28  ;;  %v2703_v54 = vpop.f32.mrb[17].mxu1  ;;  %v2053_v28 = vrot.slane %v3747_v30, 1  ;;  %v1845_v52 = vshll.u32 %v3806_v41, 16 }
 0x119   : > { %v2681_v35 = vpop.f32.mrb[17].mxu0  ;;  %v564_v55 = vpop.f32.mrb[18].mxu1 }
 0x11a   : > { %v3771_v21 = vpop.f32.mrb[18].mxu0  ;;  %v565_v61 = vadd.f32 %v564_v55, %v3692_v56  ;;  %v2704_v63 = vpop.f32.mrb[19].mxu1  ;;  %v2054_v16 = vsel %vm639_vm3, %v2052_v0, %v2053_v28  ;;  %v1840_v35 = vsel %vm287_vm1, %v1835_v34, %v1839_v9  ;;  %v1847_v55 = vrot.slane %v1845_v52, 1 }
 0x11b   : > { %v2682_v33 = vpop.f32.mrb[19].mxu0 }
 0x11c   : > { %2930 = vmatmul.mubr.msk.bf16.vlgmr.msra.gmra.mrb[124].mxu1 %vm370_vm2, %v1824_v58  ;;  %v3826_v58 = vld [vmem:[%s3303_s5 + $0x38] sm:$0xff]  }
 0x11d   : > { %2924 = vmatmul.mubr.msk.bf16.gmra.mrb[124].mxu0 %vm370_vm2, %v3115_v45  ;;  %2933 = vmatprep.mubr.msk.bf16.mxu1 %vm3208_vm0, %v3207_v1  ;;  %v1841_v45 = vshrl.u32 %v3786_v8, 16 }
 0x11e   : > { %2967 = vmatprep.mubr.msk.bf16.mxu0 %vm3208_vm0, %v3207_v1 }
 0x11f   : > { %v569_v14 = vpop.f32.mrb[20].mxu1  ;;  %v1843_v33 = vor.u32 %v1841_v45, %v1839_v9 }
 0x120   : > { %v726_v36 = vpop.f32.mrb[20].mxu0  ;;  %v570_v17 = vadd.f32 %v569_v14, %v3705_v62  ;;  %v2707_v18 = vpop.f32.mrb[21].mxu1  ;;  %v2055_v62 = vrot.slane %v3768_v51, 1  ;;  %v1853_v14 = vshll.u32 %v3826_v58, 16 }
 0x121   : > { %v3788_v56 = vadd.f32 %v726_v36, %v562_v24  ;;  %v2741_v4 = vpop.f32.mrb[21].mxu0  ;;  %v572_v25 = vpop.f32.mrb[22].mxu1 }
 0x122   : > { %v729_v15 = vpop.f32.mrb[22].mxu0  ;;  %v573_v30 = vadd.f32 %v572_v25, %v3711_v37  ;;  %v2708_v31 = vpop.f32.mrb[23].mxu1  ;;  %v2056_v46 = vsel %vm639_vm3, %v2053_v28, %v2055_v62  ;;  %v1849_v4 = vshrl.u32 %v3806_v41, 16  ;;  %v3846_v25 = vld [vmem:[%s3303_s5 + $0x40] sm:$0xff]  }
 0x123   : > { %v3792_v20 = vadd.f32 %v729_v15, %v565_v61  ;;  %v2742_v22 = vpop.f32.mrb[23].mxu0 }
 0x124   : > { %2934 = vmatmul.mubr.msk.bf16.gmra.mrb[128].mxu1 %vm370_vm2, %v1832_v26  ;;  %v1851_v18 = vor.u32 %v1849_v4, %v1847_v55  ;;  %v1855_v22 = vrot.slane %v1853_v14, 1 }
 0x125   : > { %2968 = vmatmul.mubr.msk.bf16.vlgmr.msra.gmra.mrb[128].mxu0 %vm370_vm2, %v2054_v16  ;;  %2937 = vmatprep.mubr.msk.bf16.mxu1 %vm3208_vm0, %v3207_v1 }
 0x126   : > { %2971 = vmatprep.mubr.msk.bf16.mxu0 %vm3208_vm0, %v3207_v1 }
 0x127   : > { %v577_v43 = vpop.f32.mrb[24].mxu1 }
 0x128   : > { %v734_v32 = vpop.f32.mrb[24].mxu0  ;;  %v578_v12 = vadd.f32 %v577_v43, %v3722_v13  ;;  %v2711_v47 = vpop.f32.mrb[25].mxu1  ;;  %v2057_v13 = vrot.slane %v3786_v8, 1  ;;  %v1848_v8 = vsel %vm287_vm1, %v1843_v33, %v1847_v55  ;;  %v1861_v43 = vshll.u32 %v3846_v25, 16 }
 0x129   : > { %v3808_v10 = vadd.f32 %v734_v32, %v570_v17  ;;  %v2745_v37 = vpop.f32.mrb[25].mxu0  ;;  %v580_v51 = vpop.f32.mrb[26].mxu1 }
 0x12a   : > { %v737_v44 = vpop.f32.mrb[26].mxu0  ;;  %v581_v53 = vadd.f32 %v580_v51, %v3730_v19  ;;  %v2712_v24 = vpop.f32.mrb[27].mxu1  ;;  %v2058_v63 = vsel %vm639_vm3, %v2055_v62, %v2057_v13  ;;  %v1857_v37 = vshrl.u32 %v3826_v58, 16  ;;  %v3866_v51 = vld [vmem:[%s3303_s5 + $0x48] sm:$0xff]  }
 0x12b   : > { %v3812_v49 = vadd.f32 %v737_v44, %v573_v30  ;;  %v2746_v50 = vpop.f32.mrb[27].mxu0 }
 0x12c   : > { %2938 = vmatmul.mubr.msk.bf16.gmra.mrb[132].mxu1 %vm370_vm2, %v1840_v35  ;;  %v1859_v47 = vor.u32 %v1857_v37, %v1855_v22  ;;  %v1863_v50 = vrot.slane %v1861_v43, 1 }
 0x12d   : > { %2972 = vmatmul.mubr.msk.bf16.gmra.mrb[132].mxu0 %vm370_vm2, %v2056_v46  ;;  %2941 = vmatprep.mubr.msk.bf16.mxu1 %vm3208_vm0, %v3207_v1 }
 0x12e   : > { %2975 = vmatprep.mubr.msk.bf16.mxu0 %vm3208_vm0, %v3207_v1 }
 0x12f   : > { %v585_v39 = vpop.f32.mrb[28].mxu1 }
 0x130   : > { %v742_v54 = vpop.f32.mrb[28].mxu0  ;;  %v586_v0 = vadd.f32 %v585_v39, %v3741_v27  ;;  %v2715_v28 = vpop.f32.mrb[29].mxu1  ;;  %v2059_v27 = vrot.slane %v3806_v41, 1  ;;  %v1856_v41 = vsel %vm287_vm1, %v1851_v18, %v1855_v22  ;;  %v1869_v39 = vshll.u32 %v3866_v51, 16 }
 0x131   : > { %v3828_v59 = vadd.f32 %v742_v54, %v578_v12  ;;  %v2749_v19 = vpop.f32.mrb[29].mxu0  ;;  %v588_v7 = vpop.f32.mrb[30].mxu1 }
 0x132   : > { %v745_v61 = vpop.f32.mrb[30].mxu0  ;;  %v589_v15 = vadd.f32 %v588_v7, %v3750_v38  ;;  %v2716_v16 = vpop.f32.mrb[31].mxu1  ;;  %v2060_v30 = vsel %vm639_vm3, %v2057_v13, %v2059_v27  ;;  %v1865_v19 = vshrl.u32 %v3846_v25, 16  ;;  %v3886_v7 = vld [vmem:[%s3303_s5 + $0x50] sm:$0xff]  }
 0x133   : > { %v3832_v36 = vadd.f32 %v745_v61, %v581_v53  ;;  %v2750_v6 = vpop.f32.mrb[31].mxu0 }
 0x134   : > { %2942 = vmatmul.mubr.msk.bf16.gmra.mrb[136].mxu1 %vm370_vm2, %v1848_v8  ;;  %v1867_v28 = vor.u32 %v1865_v19, %v1863_v50  ;;  %v1871_v6 = vrot.slane %v1869_v39, 1 }
 0x135   : > { %2976 = vmatmul.mubr.msk.bf16.gmra.mrb[136].mxu0 %vm370_vm2, %v2058_v63  ;;  %2945 = vmatprep.mubr.msk.bf16.mxu1 %vm3208_vm0, %v3207_v1 }
 0x136   : > { %2979 = vmatprep.mubr.msk.bf16.mxu0 %vm3208_vm0, %v3207_v1 }
 0x137   : > { %v593_v11 = vpop.f32.mrb[32].mxu1 }
 0x138   : > { %v750_v17 = vpop.f32.mrb[32].mxu0  ;;  %v594_v31 = vadd.f32 %v593_v11, %v3763_v48  ;;  %v2719_v62 = vpop.f32.mrb[33].mxu1  ;;  %v2061_v48 = vrot.slane %v3826_v58, 1  ;;  %v1864_v58 = vsel %vm287_vm1, %v1859_v47, %v1863_v50  ;;  %v1877_v11 = vshll.u32 %v3886_v7, 16 }
 0x139   : > { %v3848_v26 = vadd.f32 %v750_v17, %v586_v0  ;;  %v2753_v38 = vpop.f32.mrb[33].mxu0  ;;  %v596_v9 = vpop.f32.mrb[34].mxu1 }
 0x13a   : > { %v753_v29 = vpop.f32.mrb[34].mxu0  ;;  %v597_v44 = vadd.f32 %v596_v9, %v3771_v21  ;;  %v2720_v46 = vpop.f32.mrb[35].mxu1  ;;  %v2062_v53 = vsel %vm639_vm3, %v2059_v27, %v2061_v48  ;;  %v1873_v38 = vshrl.u32 %v3866_v51, 16  ;;  %v3126_v9 = vld [vmem:[%s3303_s5 + $0x58] ss:$0 sps:$4 sm:$0x11]  }
 0x13b   : > { %v3852_v32 = vadd.f32 %v753_v29, %v589_v15  ;;  %v2754_v34 = vpop.f32.mrb[35].mxu0  ;;  %s199_s5 = sand.u32 1, %s3189_s13  }
 0x13c   : > { %2946 = vmatmul.mubr.msk.bf16.gmra.mrb[140].mxu1 %vm370_vm2, %v1856_v41  ;;  %v1875_v62 = vor.u32 %v1873_v38, %v1871_v6  ;;  %v1879_v34 = vrot.slane %v1877_v11, 1  ;;  %s3005_s6 = smul.u32 144, %s199_s5  ;;  %s4123_s23 = scalar_lea.sflag [#allocation3], %s199_s5 }
 0x13d   : > { %2980 = vmatmul.mubr.msk.bf16.gmra.mrb[140].mxu0 %vm370_vm2, %v2060_v30  ;;  %2949 = vmatprep.mubr.msk.bf16.mxu1 %vm3208_vm0, %v3207_v1 }
 0x13e   : > { %2983 = vmatprep.mubr.msk.bf16.mxu0 %vm3208_vm0, %v3207_v1  ;;  %s4062_s9 = scalar_lea.vmem [#allocation2], %s3005_s6 }
 0x13f   : > { %v601_v45 = vpop.f32.mrb[36].mxu1  ;;  %s2303_s11 = sshll.u32 %s4062_s9, 4  ;;  %s4112_s11 = int_to_ptr.vmem [resolvable:$true] %s2303_s11 }
 0x140   : > { %v758_v12 = vpop.f32.mrb[36].mxu0  ;;  %v602_v24 = vadd.f32 %v601_v45, %v3694_v57  ;;  %v2723_v13 = vpop.f32.mrb[37].mxu1  ;;  %v2063_v57 = vrot.slane %v3846_v25, 1  ;;  %v1872_v25 = vsel %vm287_vm1, %v1867_v28, %v1871_v6  ;;  %v1885_v45 = vshll.u32 %v3126_v9, 16  ;;  %s3127_s15 = scalar_lea.vmem %s4112_s11, 2304  ;;  %p3134_p1 = scmp.lt.s32.totalorder %s4112_s11, %s3132_s27 }
 0x141   : > { %v3868_v35 = vadd.f32 %v758_v12, %v594_v31  ;;  %v2757_v21 = vpop.f32.mrb[37].mxu0  ;;  %v604_v55 = vpop.f32.mrb[38].mxu1  ;;  %p3128_p12 = scmp.ne.s32.totalorder %s4112_s11, %s3127_s15  ;;  %p3135_p2 = scmp.lt.s32.totalorder %s3133_s28, %s3127_s15 }
 0x142   : > { %v761_v52 = vpop.f32.mrb[38].mxu0  ;;  %v605_v61 = vadd.f32 %v604_v55, %v3696_v60  ;;  %v2724_v63 = vpop.f32.mrb[39].mxu1  ;;  %v2064_v15 = vsel %vm639_vm3, %v2061_v48, %v2063_v57  ;;  %v1881_v21 = vshrl.u32 %v3886_v7, 16 }
 0x143   : > { %v3872_v54 = vadd.f32 %v761_v52, %v597_v44  ;;  %v2758_v33 = vpop.f32.mrb[39].mxu0  ;;  %p3129_p13 = pnand %p3128_p12, %p3272_p4  ;;  %p3136_p3 = por %p3135_p2, %p3134_p1 }
 0x144   : > { %2950 = vmatmul.mubr.msk.bf16.gmra.mrb[144].mxu1 %vm370_vm2, %v1864_v58  ;;  %v1883_v13 = vor.u32 %v1881_v21, %v1879_v34  ;;  %v1887_v33 = vrot.slane %v1885_v45, 1 }
 0x145   : > { %2984 = vmatmul.mubr.msk.bf16.gmra.mrb[144].mxu0 %vm370_vm2, %v2062_v53  ;;  %2953 = vmatprep.mubr.msk.bf16.mxu1 %vm3208_vm0, %v3207_v1  ;;  %p3130_p0 = pneg %p3129_p13 }
 0x146   : > { %2987 = vmatprep.mubr.msk.bf16.mxu0 %vm3208_vm0, %v3207_v1  ;;  %v1888_v6 = vsel %vm287_vm1, %v1883_v13, %v1887_v33 }
 0x147   : > { %v609_v4 = vpop.f32.mrb[40].mxu1  ;;  %p3137_p5 = pnand %p3136_p3, %p3130_p0 }
 0x148   : > { %v766_v0 = vpop.f32.mrb[40].mxu0  ;;  %v610_v16 = vadd.f32 %v609_v4, %v3713_v2  ;;  %v2727_v27 = vpop.f32.mrb[41].mxu1  ;;  %v2065_v2 = vrot.slane %v3866_v51, 1  ;;  %v1880_v51 = vsel %vm287_vm1, %v1875_v62, %v1879_v34  ;;  %v2069_v4 = vrot.slane %v3126_v9, 1 }
 0x149   : > { %v3888_v8 = vadd.f32 %v766_v0, %v602_v24  ;;  %v2761_v60 = vpop.f32.mrb[41].mxu0  ;;  %v612_v22 = vpop.f32.mrb[42].mxu1 }
 0x14a   : > { %v769_v14 = vpop.f32.mrb[42].mxu0  ;;  %v613_v29 = vadd.f32 %v612_v22, %v3715_v3  ;;  %v2728_v30 = vpop.f32.mrb[43].mxu1  ;;  %v2066_v44 = vsel %vm639_vm3, %v2063_v57, %v2065_v2 }
 0x14b   : > { %v3892_v17 = vadd.f32 %v769_v14, %v605_v61  ;;  %v2762_v18 = vpop.f32.mrb[43].mxu0 }
 0x14c   : > { %2954 = vmatmul.mubr.msk.bf16.gmra.mrb[148].mxu1 %vm370_vm2, %v1872_v25 }
 0x14d   : > { %2988 = vmatmul.mubr.msk.bf16.gmra.mrb[148].mxu0 %vm370_vm2, %v2064_v15  ;;  %2957 = vmatprep.mubr.msk.bf16.mxu1 %vm3208_vm0, %v3207_v1 }
 0x14e   : > { %2991 = vmatprep.mubr.msk.bf16.mxu0 %vm3208_vm0, %v3207_v1 }
 0x14f   : > { %v617_v37 = vpop.f32.mrb[44].mxu1 }
 0x150   : > { %v774_v31 = vpop.f32.mrb[44].mxu0  ;;  %v618_v46 = vadd.f32 %v617_v37, %v3732_v5  ;;  %v2731_v48 = vpop.f32.mrb[45].mxu1  ;;  %v2067_v5 = vrot.slane %v3886_v7, 1 }
 0x151   : > { %v3906_v41 = vadd.f32 %v774_v31, %v610_v16  ;;  %v2765_v3 = vpop.f32.mrb[45].mxu0  ;;  %v620_v50 = vpop.f32.mrb[46].mxu1 }
 0x152   : > { %v777_v43 = vpop.f32.mrb[46].mxu0  ;;  %v621_v52 = vadd.f32 %v620_v50, %v3734_v23  ;;  %v2732_v53 = vpop.f32.mrb[47].mxu1  ;;  %v2068_v39 = vsel %vm639_vm3, %v2065_v2, %v2067_v5  ;;  %v2070_v18 = vsel %vm639_vm3, %v2067_v5, %v2069_v4 }
 0x153   : > { %v3910_v12 = vadd.f32 %v777_v43, %v613_v29  ;;  %v2766_v47 = vpop.f32.mrb[47].mxu0 }
 0x154   : > { %2958 = vmatmul.mubr.msk.bf16.gmra.mrb[152].mxu1 %vm370_vm2, %v1880_v51 }
 0x155   : > { %2992 = vmatmul.mubr.msk.bf16.gmra.mrb[152].mxu0 %vm370_vm2, %v2066_v44  ;;  %2961 = vmatprep.mubr.msk.bf16.mxu1 %vm3208_vm0, %v3207_v1 }
 0x156   : > { %2995 = vmatprep.mubr.msk.bf16.mxu0 %vm3208_vm0, %v3207_v1 }
 0x157   : > { %v625_v23 = vpop.f32.mrb[48].mxu1 }
 0x158   : > { %v782_v24 = vpop.f32.mrb[48].mxu0  ;;  %v626_v61 = vadd.f32 %v625_v23, %v3752_v40  ;;  %v2735_v63 = vpop.f32.mrb[49].mxu1 }
 0x159   : > { %v3922_v55 = vadd.f32 %v782_v24, %v618_v46  ;;  %v2769_v58 = vpop.f32.mrb[49].mxu0  ;;  %v628_v28 = vpop.f32.mrb[50].mxu1 }
 0x15a   : > { %v785_v19 = vpop.f32.mrb[50].mxu0  ;;  %v629_v7 = vadd.f32 %v628_v28, %v3754_v42  ;;  %v2736_v60 = vpop.f32.mrb[51].mxu1 }
 0x15b   : > { %v3926_v57 = vadd.f32 %v785_v19, %v621_v52  ;;  %v2770_v0 = vpop.f32.mrb[51].mxu0 }
 0x15c   : > { %2962 = vmatmul.mubr.msk.bf16.gmra.mrb[156].mxu1 %vm370_vm2, %v1888_v6 }
 0x15d   : > { %2996 = vmatmul.mubr.msk.bf16.gmra.mrb[156].mxu0 %vm370_vm2, %v2068_v39 }
 0x15e   : > { %2999 = vmatprep.mubr.msk.bf16.mxu0 %vm3208_vm0, %v3207_v1 }
 0x15f   : > { %v948_v16 = vpop.f32.mrb[52].mxu1 }
 0x160   : > { %v790_v14 = vpop.f32.mrb[52].mxu0  ;;  %v1019_v22 = vadd.f32 %v948_v16, %v3788_v56  ;;  %v2779_v42 = vpop.f32.mrb[53].mxu1 }
 0x161   : > { %v3934_v40 = vadd.f32 %v790_v14, %v626_v61  ;;  %v2773_v15 = vpop.f32.mrb[53].mxu0  ;;  %v951_v11 = vpop.f32.mrb[54].mxu1 }
 0x162   : > { %v793_v27 = vpop.f32.mrb[54].mxu0  ;;  %v1020_v1 = vadd.f32 %v951_v11, %v3792_v20  ;;  %v2780_v29 = vpop.f32.mrb[55].mxu1 }
 0x163   : > { %v3938_v25 = vadd.f32 %v793_v27, %v629_v7  ;;  %v2774_v38 = vpop.f32.mrb[55].mxu0 }
 0x165   : > { %3000 = vmatmul.mubr.msk.bf16.gmra.mrb[160].mxu0 %vm370_vm2, %v2070_v18 }
 0x167   : > { %v956_v62 = vpop.f32.mrb[56].mxu1 }
 0x168   : > { %v1250_v30 = vpop.f32.mrb[56].mxu0  ;;  %v1021_v9 = vadd.f32 %v956_v62, %v3808_v10  ;;  %v2783_v3 = vpop.f32.mrb[57].mxu1 }
 0x169   : > { %v3942_v2 = vadd.f32 %v1250_v30, %v1019_v22  ;;  %v2817_v31 = vpop.f32.mrb[57].mxu0  ;;  %v959_v43 = vpop.f32.mrb[58].mxu1 }
 0x16a   : > { %v1253_v34 = vpop.f32.mrb[58].mxu0  ;;  %v1022_v44 = vadd.f32 %v959_v43, %v3812_v49  ;;  %v2784_v46 = vpop.f32.mrb[59].mxu1 }
 0x16b   : > { %v3945_v56 = vadd.f32 %v1253_v34, %v1020_v1  ;;  %v2818_v37 = vpop.f32.mrb[59].mxu0 }
 0x16f   : > { %v964_v50 = vpop.f32.mrb[60].mxu1 }
 0x170   : > { %v1258_v20 = vpop.f32.mrb[60].mxu0  ;;  %v1023_v21 = vadd.f32 %v964_v50, %v3828_v59  ;;  %v2787_v45 = vpop.f32.mrb[61].mxu1 }
 0x171   : > { %v3948_v48 = vadd.f32 %v1258_v20, %v1021_v9  ;;  %v2821_v47 = vpop.f32.mrb[61].mxu0  ;;  %v967_v53 = vpop.f32.mrb[62].mxu1 }
 0x172   : > { %v1261_v51 = vpop.f32.mrb[62].mxu0  ;;  %v1024_v5 = vadd.f32 %v967_v53, %v3832_v36  ;;  %v2788_v24 = vpop.f32.mrb[63].mxu1 }
 0x173   : > { %v3951_v52 = vadd.f32 %v1261_v51, %v1022_v44  ;;  %v2822_v10 = vpop.f32.mrb[63].mxu0 }
 0x177   : > { %v972_v58 = vpop.f32.mrb[64].mxu1 }
 0x178   : > { %v1266_v13 = vpop.f32.mrb[64].mxu0  ;;  %v1025_v19 = vadd.f32 %v972_v58, %v3848_v26  ;;  %v2791_v39 = vpop.f32.mrb[65].mxu1 }
 0x179   : > { %v3954_v33 = vadd.f32 %v1266_v13, %v1023_v21  ;;  %v2825_v49 = vpop.f32.mrb[65].mxu0  ;;  %v975_v63 = vpop.f32.mrb[66].mxu1 }
 0x17a   : > { %v1269_v23 = vpop.f32.mrb[66].mxu0  ;;  %v1026_v0 = vadd.f32 %v975_v63, %v3852_v32  ;;  %v2792_v28 = vpop.f32.mrb[67].mxu1 }
 0x17b   : > { %v3957_v61 = vadd.f32 %v1269_v23, %v1024_v5  ;;  %v2826_v59 = vpop.f32.mrb[67].mxu0 }
 0x17f   : > { %v980_v60 = vpop.f32.mrb[68].mxu1 }
 0x180   : > { %v1274_v6 = vpop.f32.mrb[68].mxu0  ;;  %v1027_v14 = vadd.f32 %v980_v60, %v3868_v35  ;;  %v2795_v15 = vpop.f32.mrb[69].mxu1 }
 0x181   : > { %v3960_v7 = vadd.f32 %v1274_v6, %v1025_v19  ;;  %v2829_v36 = vpop.f32.mrb[69].mxu0  ;;  %v983_v27 = vpop.f32.mrb[70].mxu1 }
 0x182   : > { %v1277_v4 = vpop.f32.mrb[70].mxu0  ;;  %v1028_v18 = vadd.f32 %v983_v27, %v3872_v54  ;;  %v2796_v22 = vpop.f32.mrb[71].mxu1 }
 0x183   : > { %v3963_v16 = vadd.f32 %v1277_v4, %v1026_v0  ;;  %v2830_v26 = vpop.f32.mrb[71].mxu0 }
 0x187   : > { %v988_v11 = vpop.f32.mrb[72].mxu1 }
 0x188   : > { %v1282_v42 = vpop.f32.mrb[72].mxu0  ;;  %v1029_v29 = vadd.f32 %v988_v11, %v3888_v8  ;;  %v2799_v30 = vpop.f32.mrb[73].mxu1 }
 0x189   : > { %v3966_v38 = vadd.f32 %v1282_v42, %v1027_v14  ;;  %v2833_v32 = vpop.f32.mrb[73].mxu0  ;;  %v991_v62 = vpop.f32.mrb[74].mxu1 }
 0x18a   : > { %v1285_v1 = vpop.f32.mrb[74].mxu0  ;;  %v1030_v34 = vadd.f32 %v991_v62, %v3892_v17  ;;  %v2800_v9 = vpop.f32.mrb[75].mxu1 }
 0x18b   : > { %v3969_v31 = vadd.f32 %v1285_v1, %v1028_v18  ;;  %v2834_v35 = vpop.f32.mrb[75].mxu0 }
 0x18f   : > { %v996_v43 = vpop.f32.mrb[76].mxu1 }
 0x190   : > { %v1290_v3 = vpop.f32.mrb[76].mxu0  ;;  %v1031_v46 = vadd.f32 %v996_v43, %v3906_v41  ;;  %v2803_v20 = vpop.f32.mrb[77].mxu1 }
 0x191   : > { %v3972_v37 = vadd.f32 %v1290_v3, %v1029_v29  ;;  %v2837_v54 = vpop.f32.mrb[77].mxu0  ;;  %v999_v50 = vpop.f32.mrb[78].mxu1 }
 0x192   : > { %v1293_v44 = vpop.f32.mrb[78].mxu0  ;;  %v1032_v51 = vadd.f32 %v999_v50, %v3910_v12  ;;  %v2804_v21 = vpop.f32.mrb[79].mxu1 }
 0x193   : > { %v3975_v47 = vadd.f32 %v1293_v44, %v1030_v34  ;;  %v2838_v8 = vpop.f32.mrb[79].mxu0 }
 0x197   : > { %v1004_v53 = vpop.f32.mrb[80].mxu1 }
 0x198   : > { %v1298_v45 = vpop.f32.mrb[80].mxu0  ;;  %v1033_v24 = vadd.f32 %v1004_v53, %v3922_v55  ;;  %v2807_v13 = vpop.f32.mrb[81].mxu1 }
 0x199   : > { %v3978_v10 = vadd.f32 %v1298_v45, %v1031_v46  ;;  %v2841_v17 = vpop.f32.mrb[81].mxu0  ;;  %v1007_v58 = vpop.f32.mrb[82].mxu1 }
 0x19a   : > { %v1301_v5 = vpop.f32.mrb[82].mxu0  ;;  %v1034_v23 = vadd.f32 %v1007_v58, %v3926_v57  ;;  %v2808_v19 = vpop.f32.mrb[83].mxu1 }
 0x19b   : > { %v3981_v49 = vadd.f32 %v1301_v5, %v1032_v51  ;;  %v2842_v41 = vpop.f32.mrb[83].mxu0 }
 0x19f   : > { %v1012_v63 = vpop.f32.mrb[84].mxu1 }
 0x1a0   : > { %v1306_v39 = vpop.f32.mrb[84].mxu0  ;;  %v1035_v28 = vadd.f32 %v1012_v63, %v3934_v40  ;;  %v2811_v6 = vpop.f32.mrb[85].mxu1 }
 0x1a1   : > { %v3984_v59 = vadd.f32 %v1306_v39, %v1033_v24  ;;  %v2845_v12 = vpop.f32.mrb[85].mxu0  ;;  %v1015_v60 = vpop.f32.mrb[86].mxu1 }
 0x1a2   : > { %v1309_v0 = vpop.f32.mrb[86].mxu0  ;;  %v1036_v4 = vadd.f32 %v1015_v60, %v3938_v25  ;;  %v2812_v14 = vpop.f32.mrb[87].mxu1 }
 0x1a3   : > { %v3987_v36 = vadd.f32 %v1309_v0, %v1034_v23  ;;  %v2846_v55 = vpop.f32.mrb[87].mxu0 }
 0x1a7   : > { %v1432_v27 = vpop.f32.mrb[88].mxu1 }
 0x1a8   : > { %v1314_v15 = vpop.f32.mrb[88].mxu0  ;;  %v1503_v22 = vadd.f32 %v1432_v27, %v3942_v2  ;;  %v2855_v42 = vpop.f32.mrb[89].mxu1 }
 0x1a9   : > { %v3990_v26 = vadd.f32 %v1314_v15, %v1035_v28  ;;  %v2849_v57 = vpop.f32.mrb[89].mxu0  ;;  %v1435_v11 = vpop.f32.mrb[90].mxu1 }
 0x1aa   : > { %v1317_v18 = vpop.f32.mrb[90].mxu0  ;;  %v1504_v1 = vadd.f32 %v1435_v11, %v3945_v56  ;;  %v2856_v29 = vpop.f32.mrb[91].mxu1 }
 0x1ab   : > { %v3993_v32 = vadd.f32 %v1317_v18, %v1036_v4  ;;  %v2850_v40 = vpop.f32.mrb[91].mxu0 }
 0x1af   : > { %v1440_v62 = vpop.f32.mrb[92].mxu1 }
 0x1b0   : > { %v1654_v30 = vpop.f32.mrb[92].mxu0  ;;  %v1505_v9 = vadd.f32 %v1440_v62, %v3948_v48  ;;  %v2859_v3 = vpop.f32.mrb[93].mxu1 }
 0x1b1   : > { %v3996_v35 = vadd.f32 %v1654_v30, %v1503_v22  ;;  %v2893_v25 = vpop.f32.mrb[93].mxu0  ;;  %v1443_v43 = vpop.f32.mrb[94].mxu1 }
 0x1b2   : > { %v1657_v34 = vpop.f32.mrb[94].mxu0  ;;  %v1506_v44 = vadd.f32 %v1443_v43, %v3951_v52  ;;  %v2860_v46 = vpop.f32.mrb[95].mxu1 }
 0x1b3   : > { %v3999_v54 = vadd.f32 %v1657_v34, %v1504_v1  ;;  %v2894_v2 = vpop.f32.mrb[95].mxu0 }
 0x1b7   : > { %v1448_v50 = vpop.f32.mrb[96].mxu1 }
 0x1b8   : > { %v1662_v20 = vpop.f32.mrb[96].mxu0  ;;  %v1507_v21 = vadd.f32 %v1448_v50, %v3954_v33  ;;  %v2863_v45 = vpop.f32.mrb[97].mxu1 }
 0x1b9   : > { %v4002_v8 = vadd.f32 %v1662_v20, %v1505_v9  ;;  %v2897_v56 = vpop.f32.mrb[97].mxu0  ;;  %v1451_v53 = vpop.f32.mrb[98].mxu1 }
 0x1ba   : > { %v1665_v51 = vpop.f32.mrb[98].mxu0  ;;  %v1508_v5 = vadd.f32 %v1451_v53, %v3957_v61  ;;  %v2864_v24 = vpop.f32.mrb[99].mxu1 }
 0x1bb   : > { %v4005_v17 = vadd.f32 %v1665_v51, %v1506_v44  ;;  %v2898_v48 = vpop.f32.mrb[99].mxu0 }
 0x1bf   : > { %v1456_v58 = vpop.f32.mrb[100].mxu1 }
 0x1c0   : > { %v1670_v13 = vpop.f32.mrb[100].mxu0  ;;  %v1509_v19 = vadd.f32 %v1456_v58, %v3960_v7  ;;  %v2867_v39 = vpop.f32.mrb[101].mxu1 }
 0x1c1   : > { %v4008_v41 = vadd.f32 %v1670_v13, %v1507_v21  ;;  %v2901_v52 = vpop.f32.mrb[101].mxu0  ;;  %v1459_v63 = vpop.f32.mrb[102].mxu1 }
 0x1c2   : > { %v1673_v23 = vpop.f32.mrb[102].mxu0  ;;  %v1510_v0 = vadd.f32 %v1459_v63, %v3963_v16  ;;  %v2868_v28 = vpop.f32.mrb[103].mxu1 }
 0x1c3   : > { %v4011_v12 = vadd.f32 %v1673_v23, %v1508_v5  ;;  %v2902_v33 = vpop.f32.mrb[103].mxu0 }
 0x1c7   : > { %v1464_v60 = vpop.f32.mrb[104].mxu1 }
 0x1c8   : > { %v1678_v6 = vpop.f32.mrb[104].mxu0  ;;  %v1511_v14 = vadd.f32 %v1464_v60, %v3966_v38  ;;  %v2871_v15 = vpop.f32.mrb[105].mxu1 }
 0x1c9   : > { %v4014_v55 = vadd.f32 %v1678_v6, %v1509_v19  ;;  %v2905_v61 = vpop.f32.mrb[105].mxu0  ;;  %v1467_v27 = vpop.f32.mrb[106].mxu1 }
 0x1ca   : > { %v1681_v4 = vpop.f32.mrb[106].mxu0  ;;  %v1512_v18 = vadd.f32 %v1467_v27, %v3969_v31  ;;  %v2872_v22 = vpop.f32.mrb[107].mxu1 }
 0x1cb   : > { %v4017_v57 = vadd.f32 %v1681_v4, %v1510_v0  ;;  %v2906_v7 = vpop.f32.mrb[107].mxu0 }
 0x1cf   : > { %v1472_v11 = vpop.f32.mrb[108].mxu1 }
 0x1d0   : > { %v1686_v42 = vpop.f32.mrb[108].mxu0  ;;  %v1513_v29 = vadd.f32 %v1472_v11, %v3972_v37  ;;  %v2875_v30 = vpop.f32.mrb[109].mxu1 }
 0x1d1   : > { %v4020_v40 = vadd.f32 %v1686_v42, %v1511_v14  ;;  %v2909_v16 = vpop.f32.mrb[109].mxu0  ;;  %v1475_v62 = vpop.f32.mrb[110].mxu1  ;;  %v4056_v30 = vld [vmem:[%s4171_s2] ss:$0 sm:$0xff] }
 0x1d2   : > { %v1689_v1 = vpop.f32.mrb[110].mxu0  ;;  %v1514_v34 = vadd.f32 %v1475_v62, %v3975_v47  ;;  %v2876_v9 = vpop.f32.mrb[111].mxu1 }
 0x1d3   : > { %v4023_v25 = vadd.f32 %v1689_v1, %v1512_v18  ;;  %v2910_v38 = vpop.f32.mrb[111].mxu0 }
 0x1d7   : > { %v1480_v43 = vpop.f32.mrb[112].mxu1 }
 0x1d8   : > { %v1694_v3 = vpop.f32.mrb[112].mxu0  ;;  %v1515_v46 = vadd.f32 %v1480_v43, %v3978_v10  ;;  %v2879_v20 = vpop.f32.mrb[113].mxu1 }
 0x1d9   : > { %v4026_v2 = vadd.f32 %v1694_v3, %v1513_v29  ;;  %v2913_v31 = vpop.f32.mrb[113].mxu0  ;;  %v1483_v50 = vpop.f32.mrb[114].mxu1 }
 0x1da   : > { %v1697_v44 = vpop.f32.mrb[114].mxu0  ;;  %v1516_v51 = vadd.f32 %v1483_v50, %v3981_v49  ;;  %v2880_v21 = vpop.f32.mrb[115].mxu1 }
 0x1db   : > { %v4029_v56 = vadd.f32 %v1697_v44, %v1514_v34  ;;  %v2914_v37 = vpop.f32.mrb[115].mxu0 }
 0x1df   : > { %v1488_v53 = vpop.f32.mrb[116].mxu1 }
 0x1e0   : > { %v1702_v45 = vpop.f32.mrb[116].mxu0  ;;  %v1517_v24 = vadd.f32 %v1488_v53, %v3984_v59  ;;  %v2883_v13 = vpop.f32.mrb[117].mxu1 }
 0x1e1   : > { %v4032_v48 = vadd.f32 %v1702_v45, %v1515_v46  ;;  %v2917_v47 = vpop.f32.mrb[117].mxu0  ;;  %v1491_v58 = vpop.f32.mrb[118].mxu1 }
 0x1e2   : > { %v1705_v5 = vpop.f32.mrb[118].mxu0  ;;  %v1518_v23 = vadd.f32 %v1491_v58, %v3987_v36  ;;  %v2884_v19 = vpop.f32.mrb[119].mxu1 }
 0x1e3   : > { %v4035_v52 = vadd.f32 %v1705_v5, %v1516_v51  ;;  %v2918_v10 = vpop.f32.mrb[119].mxu0 }
 0x1e7   : > { %v1496_v63 = vpop.f32.mrb[120].mxu1 }
 0x1e8   : > { %v1710_v39 = vpop.f32.mrb[120].mxu0  ;;  %v1519_v28 = vadd.f32 %v1496_v63, %v3990_v26  ;;  %v2887_v6 = vpop.f32.mrb[121].mxu1 }
 0x1e9   : > { %v4038_v33 = vadd.f32 %v1710_v39, %v1517_v24  ;;  %v2921_v49 = vpop.f32.mrb[121].mxu0  ;;  %v1499_v60 = vpop.f32.mrb[122].mxu1 }
 0x1ea   : > { %v1713_v0 = vpop.f32.mrb[122].mxu0  ;;  %v1520_v4 = vadd.f32 %v1499_v60, %v3993_v32  ;;  %v2888_v14 = vpop.f32.mrb[123].mxu1 }
 0x1eb   : > { %v4041_v61 = vadd.f32 %v1713_v0, %v1518_v23  ;;  %v2922_v59 = vpop.f32.mrb[123].mxu0 }
 0x1ef   : > { %v1956_v27 = vpop.f32.mrb[124].mxu1 }
 0x1f0   : > { %v1718_v36 = vpop.f32.mrb[124].mxu0  ;;  %v2027_v22 = vadd.f32 %v1956_v27, %v3996_v35  ;;  %v2931_v42 = vpop.f32.mrb[125].mxu1 }
 0x1f1   : > { %v4044_v15 = vadd.f32 %v1718_v36, %v1519_v28  ;;  %v2925_v7 = vpop.f32.mrb[125].mxu0  ;;  %v1959_v11 = vpop.f32.mrb[126].mxu1 }
 0x1f2   : > { %v1721_v18 = vpop.f32.mrb[126].mxu0  ;;  %v2028_v1 = vadd.f32 %v1959_v11, %v3999_v54  ;;  %v2932_v29 = vpop.f32.mrb[127].mxu1 }
 0x1f3   : > { %v4047_v26 = vadd.f32 %v1721_v18, %v1520_v4  ;;  %v2926_v16 = vpop.f32.mrb[127].mxu0 }
 0x1f7   : > { %v1964_v35 = vpop.f32.mrb[128].mxu1 }
 0x1f8   : > { %v2138_v32 = vpop.f32.mrb[128].mxu0  ;;  %v2029_v9 = vadd.f32 %v1964_v35, %v4002_v8  ;;  %v2935_v31 = vpop.f32.mrb[129].mxu1 }
 0x1f9   : > { %v2209_v38 = vadd.f32 %v2138_v32, %v2027_v22  ;;  %v2969_v62 = vpop.f32.mrb[129].mxu0  ;;  %v1967_v44 = vpop.f32.mrb[130].mxu1 }
 0x1fa   : > { %v2141_v34 = vpop.f32.mrb[130].mxu0  ;;  %v2030_v20 = vadd.f32 %v1967_v44, %v4005_v17  ;;  %v2936_v50 = vpop.f32.mrb[131].mxu1 }
 0x1fb   : > { %v2234_v3 = vadd.f32 %v4056_v30, %v2209_v38  ;;  %v2210_v54 = vadd.f32 %v2141_v34, %v2028_v1  ;;  %v2970_v43 = vpop.f32.mrb[131].mxu0 }
 0x1fd   : > { %v2252_v46 = vmax.f32 %v2234_v3, 0.0  ;;  %v2235_v37 = vadd.f32 %v4056_v30, %v2210_v54 }
 0x1ff   : > { %2270 = vst [vmem:[%s4062_s9] sm:$0xff] %v2252_v46  ;;  %v2253_v51 = vmax.f32 %v2235_v37, 0.0  ;;  %v1972_v47 = vpop.f32.mrb[132].mxu1 }
 0x200   : > { %v2146_v21 = vpop.f32.mrb[132].mxu0  ;;  %v2031_v5 = vadd.f32 %v1972_v47, %v4008_v41  ;;  %v2939_v24 = vpop.f32.mrb[133].mxu1 }
 0x201   : > { %2271 = vst [vmem:[%s4062_s9 + $0x8] sm:$0xff] %v2253_v51  ;;  %v2211_v8 = vadd.f32 %v2146_v21, %v2029_v9  ;;  %v2973_v45 = vpop.f32.mrb[133].mxu0  ;;  %v1975_v58 = vpop.f32.mrb[134].mxu1 }
 0x202   : > { %v2149_v53 = vpop.f32.mrb[134].mxu0  ;;  %v2032_v19 = vadd.f32 %v1975_v58, %v4011_v12  ;;  %v2940_v49 = vpop.f32.mrb[135].mxu1 }
 0x203   : > { %v2236_v17 = vadd.f32 %v4056_v30, %v2211_v8  ;;  %v2212_v13 = vadd.f32 %v2149_v53, %v2030_v20  ;;  %v2974_v10 = vpop.f32.mrb[135].mxu0 }
 0x205   : > { %v2254_v23 = vmax.f32 %v2236_v17, 0.0  ;;  %v2237_v39 = vadd.f32 %v4056_v30, %v2212_v13 }
 0x207   : > { %2272 = vst [vmem:[%s4062_s9 + $0x10] sm:$0xff] %v2254_v23  ;;  %v2255_v63 = vmax.f32 %v2237_v39, 0.0  ;;  %v1980_v41 = vpop.f32.mrb[136].mxu1 }
 0x208   : > { %v2154_v0 = vpop.f32.mrb[136].mxu0  ;;  %v2033_v60 = vadd.f32 %v1980_v41, %v4014_v55  ;;  %v2943_v14 = vpop.f32.mrb[137].mxu1 }
 0x209   : > { %2273 = vst [vmem:[%s4062_s9 + $0x18] sm:$0xff] %v2255_v63  ;;  %v2213_v28 = vadd.f32 %v2154_v0, %v2031_v5  ;;  %v2977_v6 = vpop.f32.mrb[137].mxu0  ;;  %v1983_v7 = vpop.f32.mrb[138].mxu1 }
 0x20a   : > { %v2157_v59 = vpop.f32.mrb[138].mxu0  ;;  %v2034_v18 = vadd.f32 %v1983_v7, %v4017_v57  ;;  %v2944_v42 = vpop.f32.mrb[139].mxu1 }
 0x20b   : > { %v2238_v4 = vadd.f32 %v4056_v30, %v2213_v28  ;;  %v2214_v36 = vadd.f32 %v2157_v59, %v2032_v19  ;;  %v2978_v12 = vpop.f32.mrb[139].mxu0 }
 0x20d   : > { %v2256_v27 = vmax.f32 %v2238_v4, 0.0  ;;  %v2239_v22 = vadd.f32 %v4056_v30, %v2214_v36 }
 0x20f   : > { %2274 = vst [vmem:[%s4062_s9 + $0x20] sm:$0xff] %v2256_v27  ;;  %v2257_v16 = vmax.f32 %v2239_v22, 0.0  ;;  %v1988_v55 = vpop.f32.mrb[140].mxu1 }
 0x210   : > { %v2162_v11 = vpop.f32.mrb[140].mxu0  ;;  %v2035_v38 = vadd.f32 %v1988_v55, %v4020_v40  ;;  %v2947_v35 = vpop.f32.mrb[141].mxu1 }
 0x211   : > { %2275 = vst [vmem:[%s4062_s9 + $0x28] sm:$0xff] %v2257_v16  ;;  %v2215_v1 = vadd.f32 %v2162_v11, %v2033_v60  ;;  %v2981_v29 = vpop.f32.mrb[141].mxu0  ;;  %v1991_v9 = vpop.f32.mrb[142].mxu1 }
 0x212   : > { %v2165_v32 = vpop.f32.mrb[142].mxu0  ;;  %v2036_v31 = vadd.f32 %v1991_v9, %v4023_v25  ;;  %v2948_v43 = vpop.f32.mrb[143].mxu1 }
 0x213   : > { %v2240_v62 = vadd.f32 %v4056_v30, %v2215_v1  ;;  %v2216_v34 = vadd.f32 %v2165_v32, %v2034_v18  ;;  %v2982_v57 = vpop.f32.mrb[143].mxu0 }
 0x215   : > { %v2258_v3 = vmax.f32 %v2240_v62, 0.0  ;;  %v2241_v54 = vadd.f32 %v4056_v30, %v2216_v34 }
 0x217   : > { %2276 = vst [vmem:[%s4062_s9 + $0x30] sm:$0xff] %v2258_v3  ;;  %v2259_v44 = vmax.f32 %v2241_v54, 0.0  ;;  %v1996_v40 = vpop.f32.mrb[144].mxu1 }
 0x218   : > { %v2170_v46 = vpop.f32.mrb[144].mxu0  ;;  %v2037_v51 = vadd.f32 %v1996_v40, %v4026_v2  ;;  %v2951_v8 = vpop.f32.mrb[145].mxu1 }
 0x219   : > { %2277 = vst [vmem:[%s4062_s9 + $0x38] sm:$0xff] %v2259_v44  ;;  %v2217_v20 = vadd.f32 %v2170_v46, %v2035_v38  ;;  %v2985_v37 = vpop.f32.mrb[145].mxu0  ;;  %v1999_v47 = vpop.f32.mrb[146].mxu1 }
 0x21a   : > { %v2173_v50 = vpop.f32.mrb[146].mxu0  ;;  %v2038_v5 = vadd.f32 %v1999_v47, %v4029_v56  ;;  %v2952_v24 = vpop.f32.mrb[147].mxu1 }
 0x21b   : > { %v2242_v21 = vadd.f32 %v4056_v30, %v2217_v20  ;;  %v2218_v45 = vadd.f32 %v2173_v50, %v2036_v31  ;;  %v2986_v25 = vpop.f32.mrb[147].mxu0 }
 0x21d   : > { %v2260_v53 = vmax.f32 %v2242_v21, 0.0  ;;  %v2243_v17 = vadd.f32 %v4056_v30, %v2218_v45 }
 0x21f   : > { %2278 = vst [vmem:[%s4062_s9 + $0x40] sm:$0xff] %v2260_v53  ;;  %v2261_v13 = vmax.f32 %v2243_v17, 0.0  ;;  %v2004_v2 = vpop.f32.mrb[148].mxu1 }
 0x220   : > { %v2178_v10 = vpop.f32.mrb[148].mxu0  ;;  %v2039_v39 = vadd.f32 %v2004_v2, %v4032_v48  ;;  %v2955_v63 = vpop.f32.mrb[149].mxu1 }
 0x221   : > { %2279 = vst [vmem:[%s4062_s9 + $0x48] sm:$0xff] %v2261_v13  ;;  %v2219_v58 = vadd.f32 %v2178_v10, %v2037_v51  ;;  %v2989_v23 = vpop.f32.mrb[149].mxu0  ;;  %v2007_v28 = vpop.f32.mrb[150].mxu1 }
 0x222   : > { %v2181_v19 = vpop.f32.mrb[150].mxu0  ;;  %v2040_v41 = vadd.f32 %v2007_v28, %v4035_v52  ;;  %v2956_v60 = vpop.f32.mrb[151].mxu1 }
 0x223   : > { %v2244_v49 = vadd.f32 %v4056_v30, %v2219_v58  ;;  %v2220_v0 = vadd.f32 %v2181_v19, %v2038_v5  ;;  %v2990_v56 = vpop.f32.mrb[151].mxu0 }
 0x225   : > { %v2262_v6 = vmax.f32 %v2244_v49, 0.0  ;;  %v2245_v59 = vadd.f32 %v4056_v30, %v2220_v0 }
 0x227   : > { %2280 = vst [vmem:[%s4062_s9 + $0x50] sm:$0xff] %v2262_v6  ;;  %v2263_v4 = vmax.f32 %v2245_v59, 0.0  ;;  %v2012_v48 = vpop.f32.mrb[152].mxu1 }
 0x228   : > { %v2186_v14 = vpop.f32.mrb[152].mxu0  ;;  %v2041_v27 = vadd.f32 %v2012_v48, %v4038_v33  ;;  %v2959_v22 = vpop.f32.mrb[153].mxu1 }
 0x229   : > { %2281 = vst [vmem:[%s4062_s9 + $0x58] sm:$0xff] %v2263_v4  ;;  %v2221_v36 = vadd.f32 %v2186_v14, %v2039_v39  ;;  %v2993_v12 = vpop.f32.mrb[153].mxu0  ;;  %v2015_v16 = vpop.f32.mrb[154].mxu1 }
 0x22a   : > { %v2189_v7 = vpop.f32.mrb[154].mxu0  ;;  %v2042_v1 = vadd.f32 %v2015_v16, %v4041_v61  ;;  %v2960_v55 = vpop.f32.mrb[155].mxu1 }
 0x22b   : > { %v2246_v18 = vadd.f32 %v4056_v30, %v2221_v36  ;;  %v2222_v42 = vadd.f32 %v2189_v7, %v2040_v41  ;;  %v2994_v52 = vpop.f32.mrb[155].mxu0 }
 0x22d   : > { %v2264_v11 = vmax.f32 %v2246_v18, 0.0  ;;  %v2247_v29 = vadd.f32 %v4056_v30, %v2222_v42 }
 0x22f   : > { %2282 = vst [vmem:[%s4062_s9 + $0x60] sm:$0xff] %v2264_v11  ;;  %v2265_v32 = vmax.f32 %v2247_v29, 0.0  ;;  %v2020_v33 = vpop.f32.mrb[156].mxu1 }
 0x230   : > { %v2194_v38 = vpop.f32.mrb[156].mxu0  ;;  %v2043_v57 = vadd.f32 %v2020_v33, %v4044_v15  ;;  %v2963_v3 = vpop.f32.mrb[157].mxu1 }
 0x231   : > { %2283 = vst [vmem:[%s4062_s9 + $0x68] sm:$0xff] %v2265_v32  ;;  %v2223_v62 = vadd.f32 %v2194_v38, %v2041_v27  ;;  %v2997_v35 = vpop.f32.mrb[157].mxu0  ;;  %v2023_v54 = vpop.f32.mrb[158].mxu1 }
 0x232   : > { %v2197_v34 = vpop.f32.mrb[158].mxu0  ;;  %v2044_v44 = vadd.f32 %v2023_v54, %v4047_v26  ;;  %v2964_v20 = vpop.f32.mrb[159].mxu1 }
 0x233   : > { %v2248_v9 = vadd.f32 %v4056_v30, %v2223_v62  ;;  %v2224_v31 = vadd.f32 %v2197_v34, %v2042_v1  ;;  %v2998_v61 = vpop.f32.mrb[159].mxu0 }
 0x235   : > { %v2266_v43 = vmax.f32 %v2248_v9, 0.0  ;;  %v2249_v46 = vadd.f32 %v4056_v30, %v2224_v31 }
 0x237   : > { %2284 = vst [vmem:[%s4062_s9 + $0x70] sm:$0xff] %v2266_v43  ;;  %v2267_v37 = vmax.f32 %v2249_v46, 0.0 }
 0x238   : > { %v2202_v40 = vpop.f32.mrb[160].mxu0 }
 0x239   : > { %2285 = vst [vmem:[%s4062_s9 + $0x78] sm:$0xff] %v2267_v37  ;;  %v2225_v15 = vadd.f32 %v2202_v40, %v2043_v57  ;;  %v3001_v50 = vpop.f32.mrb[161].mxu0 }
 0x23a   : > { %v2205_v51 = vpop.f32.mrb[162].mxu0 }
 0x23b   : > { %v2250_v21 = vadd.f32 %v4056_v30, %v2225_v15  ;;  %v2226_v8 = vadd.f32 %v2205_v51, %v2044_v44  ;;  %v3002_v45 = vpop.f32.mrb[163].mxu0 }
 0x23d   : > { %v2268_v26 = vmax.f32 %v2250_v21, 0.0  ;;  %v2251_v25 = vadd.f32 %v4056_v30, %v2226_v8 }
 0x23f   : > { %2286 = vst [vmem:[%s4062_s9 + $0x80] sm:$0xff] %v2268_v26  ;;  %v2269_v47 = vmax.f32 %v2251_v25, 0.0 }
 0x241   : > { %2287 = vst [vmem:[%s4062_s9 + $0x88] sm:$0xff] %v2269_v47 }
 0x242   : > { %3140 = shalt.err (!%p3137_p5)
}
 0x243   : > { %s3141_s29 = scalar_lea.hbm %s4118_s21, 2304  ;;  %s3145_s5 = scalar_lea.hbm %s4172_s3, 4608 }
 0x244   : > { %p3142_p6 = scmp.ne.s32.totalorder %s4118_s21, %s3141_s29  ;;  %p3146_p10 = scmp.lt.u32.totalorder %s4118_s21, %s4172_s3 }
 0x245   : > { %p3147_p11 = scmp.lt.u32.totalorder %s3145_s5, %s3141_s29  ;;  %p3149_p13 = scmp.lt.u32.totalorder %s3141_s29, %s4118_s21 }
 0x246   : > { %p3143_p7 = pnand %p3142_p6, %p3272_p4 }
 0x247   : > { %p3148_p12 = por %p3147_p11, %p3146_p10 }
 0x248   : > { %p3144_p9 = pneg %p3143_p7 }
 0x249   : > { %p3150_p0 = por %p3149_p13, %p3148_p12 }
 0x24b   : > { %p3151_p1 = pnand %p3150_p0, %p3144_p9 }
 0x24d   : > { %3154 = shalt.err (!%p3151_p1)
}
 0x24e   : > { %s3210_s8 = smov 128   ;;  %s3211_s9 = smov 8  }
 0x24f   : > { %3008 = dma.vmem_to_hbm [thread:$0]  (%p3272_p4), %s4112_s11, 2304, %s4118_s21, %s4123_s23, %s3210_s8, %s3210_s8, %s3211_s9  }
 0x250 PF: > { %p3014_p2 = scmp.ge.s32.totalorder %s3205_s17, 2  ;;  %s2318_s10 = sand.u32 1, %s3185_s12  }
 0x251   : > { %s2319_s18 = scalar_lea.sflag [#allocation3], %s2318_s10 }
 0x252   : > { %p3011_p3 = pnand %p3014_p2, %p3279_p8 }
 0x254   : > { %3180 = dma.done.wait (!%p3011_p3), %s2319_s18, 2304  }
 0x255   : > { %3182 = vsyncadd (!%p3011_p3), %s2319_s18, 4294964992  ;;  %s16_s17 = sadd.s32 1, %s3205_s17   ;;  %s4175_s12 = smov %s3189_s13 }
 0x256   : > { %p13_p5 = scmp.ge.s32.totalorder %s16_s17, 4   ;;  %s4176_s13 = smov %s3193_s14 }
 0x257   : > { %s4177_s14 = smov %s3285_s25  ;;  %s4178_s15 = smov %s3201_s16 }
 0x258   : > { %s4179_s16 = smov %s4181_s20  ;;  %15 = sbr.rel (!%p13_p5) target bundleno = 4 (0x4), region = 81 }
 0x25f   :  { %2324 = vsyncpa [#allocation3], 1 }
 0x260   :  { %2326 = vsyncpa [#allocation3 + $0x1], 1 }

</bundles_post_ra>
